<compile_context>
chip_gen: v6e
topology: v6e:2x2x1
jax: 0.10.0
libtpu: 0.0.40
codegen_flags: <defaults>
</compile_context>

<pallas_src>
import jax
import jax.numpy as jnp
from jax.experimental import pallas as pl
from jax.experimental.pallas import tpu as pltpu

BN_EPS = 1e-5
TILE_B = 1024                       # default batch tile; sweep 512..2048

N_LAYERS = 8                        # 3 merged-tower + 5 pred layers
ROW_DOSE = N_LAYERS                 # misc-slab row holding the dose weights
ROW_WFIN = N_LAYERS + 1             # misc-slab row holding final Linear weights
ROW_BFIN = N_LAYERS + 2             # misc-slab row: final bias, one-hot in lane 0


# ------------------------------------------------------------------ kernel ---
def simple_uno_kernel(xd_ref, dose_ref, w_ref, misc_ref, out_ref):
    """xd_ref  : (tb, 128) bf16   [cell | drug | 0-pad]        (batch tiled)
       dose_ref: (tb, 1)   f32                                  (batch tiled)
       w_ref   : (8, 128, 64) bf16 stacked, zero-padded weights (resident)
       misc_ref: (11, 64)  f32    shifts / dose row / final row (resident)
       out_ref : (1, 1, tb) f32   lane-dense sigmoid output block
    """
    f32 = jnp.float32
    bf16 = jnp.bfloat16

    def lin_relu(x, l):
        # Linear + folded BatchNorm (eval) + ReLU.  bf16 MXU operands,
        # f32 accumulate, f32 elementwise.  Static slice of the weight slab.
        k = x.shape[1]
        y = jnp.dot(x.astype(bf16), w_ref[l, :k, :], preferred_element_type=f32)
        return jnp.maximum(y + misc_ref[l], 0.0)

    # ---- merged cell|drug tower (block-diagonal weights), layers 0..2
    h = lin_relu(xd_ref[...], 0)          # (tb, 64) = [cell_hidden | drug_hidden]
    h = lin_relu(h, 1)
    h = lin_relu(h, 2)                    # (tb, 64) = [cell_latent | drug_latent]

    # ---- pred layer 1: concat([cell, drug, dose]) @ W == h @ W_xd + dose * w_dose
    k = h.shape[1]
    y = jnp.dot(h.astype(bf16), w_ref[3, :k, :], preferred_element_type=f32)
    h = jnp.maximum(y + dose_ref[...] * misc_ref[ROW_DOSE] + misc_ref[3], 0.0)

    # ---- pred layers 2..5 (Dropout == identity in eval mode)
    h = lin_relu(h, 4)
    h = lin_relu(h, 5)
    h = lin_relu(h, 6)
    h = lin_relu(h, 7)                    # (tb, 64); lanes >= 8 are exactly zero

    # ---- final Linear(8 -> 1): VPU multiply + lane reduce; the bias enters
    # through a one-hot lane vector so everything stays vectorized.
    logit = jnp.sum(h * misc_ref[ROW_WFIN] + misc_ref[ROW_BFIN],
                    axis=-1, keepdims=True)            # (tb, 1)
    # Lane-dense store: sublane->lane transpose on the (otherwise idle) XLU.
    out_ref[...] = jax.nn.sigmoid(logit.T).reshape(1, 1, -1)


# ----------------------------------------------------------------- wrapper ---
def _round_up(x, m):
    return ((x + m - 1) // m) * m


def simple_uno_forward(cell_data, drug_data, dose, w_slab, misc, *, tile_b=TILE_B):
    batch = cell_data.shape[0]
    kpad = w_slab.shape[1]

    # Host-side layout plumbing: stack [cell | drug], zero-pad features to the
    # slab's K (112 -> 128 lanes: unmasked loads, aligned MXU feed), cast bf16.
    xd = jnp.concatenate([cell_data, drug_data], axis=-1)
    feat = xd.shape[1]
    xd = jnp.pad(xd, ((0, 0), (0, kpad - feat))).astype(jnp.bfloat16)
    dose = dose.astype(jnp.float32)

    # Batch tiling: large tiles (HBM-roofline friendly), multiples of 16 (bf16
    # sublane packing); keep >= 2 grid steps when possible so v7x can shard
    # the "parallel" batch axis across both TensorCores.
    tb = max(16, _round_up(min(tile_b, _round_up(batch, 16)), 16))
    if batch > 16 and (batch + tb - 1) // tb < 2:
        tb = max(16, _round_up((batch + 1) // 2, 16))
    padded = _round_up(batch, tb)
    grid_n = padded // tb

    if padded != batch:
        pad = padded - batch
        xd = jnp.pad(xd, ((0, pad), (0, 0)))
        dose = jnp.pad(dose, ((0, pad), (0, 0)))

    # Advisory cost hint for the XLA scheduler.
    flops = 2 * padded * int(w_slab.shape[0]) * int(w_slab.shape[1]) * int(w_slab.shape[2])
    bytes_accessed = (int(w_slab.size) * 2 + int(misc.size) * 4
                      + int(xd.size) * 2 + int(dose.size) * 4 + padded * 4)
    cost = pl.CostEstimate(flops=flops, transcendentals=3 * padded,
                           bytes_accessed=bytes_accessed)

    out = pl.pallas_call(
        simple_uno_kernel,
        out_shape=jax.ShapeDtypeStruct((grid_n, 1, tb), jnp.float32),
        grid=(grid_n,),
        in_specs=[
            pl.BlockSpec((tb, kpad), lambda i: (i, 0)),          # xd   (tiled)
            pl.BlockSpec((tb, 1), lambda i: (i, 0)),             # dose (tiled)
            pl.BlockSpec(w_slab.shape, lambda i: (0, 0, 0)),     # weights (resident)
            pl.BlockSpec(misc.shape, lambda i: (0, 0)),          # misc    (resident)
        ],
        out_specs=pl.BlockSpec((1, 1, tb), lambda i: (i, 0, 0)),  # lane-dense
        compiler_params=pltpu.CompilerParams(
            dimension_semantics=("parallel",)),                   # v7x: 2 TCs
        cost_estimate=cost,
    )(xd, dose, w_slab, misc)

    return out.reshape(-1)[:batch].reshape(batch, 1)


# --------------------------------------------------------- parameter setup ---
def _init_linear(key, in_dim, out_dim):
    kw, kb = jax.random.split(key)
    w = jax.random.normal(kw, (in_dim, out_dim), jnp.float32) / jnp.sqrt(
        jnp.float32(in_dim))
    b = 0.01 * jax.random.normal(kb, (1, out_dim), jnp.float32)
    return w, b


def _init_bn(key, out_dim):
    kg, kb, km, kv = jax.random.split(key, 4)
    gamma = 1.0 + 0.1 * jax.random.normal(kg, (1, out_dim), jnp.float32)
    beta = 0.05 * jax.random.normal(kb, (1, out_dim), jnp.float32)
    mean = 0.1 * jax.random.normal(km, (1, out_dim), jnp.float32)
    var = 1.0 + 0.1 * jax.random.uniform(kv, (1, out_dim), jnp.float32)
    return gamma, beta, mean, var


def init_model(key, cell_in, drug_in, cell_sd, drug_sd, state_dim):
    """Raw (unfused) parameters mirroring the PyTorch module, eval mode."""
    inter = int(state_dim ** 0.5)
    cell_dims = [(cell_in, cell_sd), (cell_sd, cell_sd), (cell_sd, cell_sd)]
    drug_dims = [(drug_in, drug_sd), (drug_sd, drug_sd), (drug_sd, drug_sd)]
    pred_dims = ([(cell_sd + drug_sd + 1, state_dim)]
                 + [(state_dim, state_dim)] * 3 + [(state_dim, inter)])

    n_blocks = len(cell_dims) + len(drug_dims) + len(pred_dims)
    keys = jax.random.split(key, n_blocks + 1)
    kit = iter(keys)

    def block(i, o):
        kl, kn = jax.random.split(next(kit))
        w, b = _init_linear(kl, i, o)
        g, be, m, v = _init_bn(kn, o)
        return (w, b, g, be, m, v)

    return {
        "cell": [block(i, o) for i, o in cell_dims],
        "drug": [block(i, o) for i, o in drug_dims],
        "pred": [block(i, o) for i, o in pred_dims],
        "final": _init_linear(next(kit), inter, 1),
    }


def _fold_bn(w, b, g, be, m, v):
    """Fold eval-mode BatchNorm1d into the preceding Linear."""
    scale = g / jnp.sqrt(v + BN_EPS)              # (1, out)
    return w * scale, (b - m) * scale + be        # W', shift'


def build_kernel_params(model, min_kpad=128):
    """Raw params -> two stacked slabs in kernel layout.

    Returns:
      w_slab: (N_LAYERS, kpad, npad) bf16 zero-padded folded weights
              (tower layers are block-diagonal over [cell | drug]).
      misc  : (N_LAYERS + 3, npad) f32 — rows 0..7 folded-BN shifts,
              row 8 dose weights, row 9 final Linear weights, row 10 one-hot
              final bias (lane 0).
    """
    folded = []

    # Merged cell|drug tower: block-diagonal folded weights.
    for pc, pd in zip(model["cell"], model["drug"]):
        wc, sc = _fold_bn(*pc)
        wd, sd = _fold_bn(*pd)
        ic, oc = wc.shape
        idr, od = wd.shape
        w = jnp.zeros((ic + idr, oc + od), jnp.float32)
        w = w.at[:ic, :oc].set(wc).at[ic:, oc:].set(wd)
        folded.append((w, jnp.concatenate([sc, sd], axis=-1)))

    # Pred layer 1: split the dose row out of the folded weight (rank-1 term).
    wf1, sf1 = _fold_bn(*model["pred"][0])
    folded.append((wf1[:-1, :], sf1))              # W_xd
    w_dose = wf1[-1:, :]                           # (1, state_dim)

    # Pred layers 2..5.
    for p in model["pred"][1:]:
        folded.append(_fold_bn(*p))

    assert len(folded) == N_LAYERS

    npad = max(int(w.shape[1]) for w, _ in folded)
    kmax = max(int(w.shape[0]) for w, _ in folded)
    kpad = max(min_kpad, _round_up(kmax, 128))

    w_slab = jnp.zeros((N_LAYERS, kpad, npad), jnp.float32)
    shift_rows = []
    for l, (w, s) in enumerate(folded):
        k, n = w.shape
        w_slab = w_slab.at[l, :k, :n].set(w)
        shift_rows.append(jnp.pad(s.reshape(-1), (0, npad - n)))

    wfin, bfin = model["final"]                    # (inter, 1), (1, 1)
    row_dose = jnp.pad(w_dose.reshape(-1), (0, npad - w_dose.shape[1]))
    row_wfin = jnp.pad(wfin.reshape(-1), (0, npad - wfin.shape[0]))
    row_bfin = jnp.zeros((npad,), jnp.float32).at[0].set(bfin.reshape(()))

    misc = jnp.stack(shift_rows + [row_dose, row_wfin, row_bfin], axis=0)
    return w_slab.astype(jnp.bfloat16), misc.astype(jnp.float32)


# -------------------------------------------------------- pure-JAX reference -
def reference_forward(cell_data, drug_data, dose, model):
    """Unfused f32 reference with the original module structure."""
    def block(x, p):
        w, b, g, be, m, v = p
        y = x @ w + b
        y = (y - m) / jnp.sqrt(v + BN_EPS) * g + be
        return jnp.maximum(y, 0.0)

    x = cell_data
    for p in model["cell"]:
        x = block(x, p)
    d = drug_data
    for p in model["drug"]:
        d = block(d, p)
    h = jnp.concatenate([x, d, dose], axis=-1)
    for p in model["pred"]:
        h = block(h, p)
    w, b = model["final"]
    return jax.nn.sigmoid(h @ w + b)


# -------------------------------------------------------------------- main ---
if __name__ == "__main__":
    # SimpleUno(state_dim=64, dose_info=True, cell_state_dim=32,
    #           drug_state_dim=32, cell_input_dim=64, drug_input_dim=48)
    batch = 256                       # splits into 2 grid steps of 128 rows
    cell_input_dim, drug_input_dim = 64, 48
    cell_state_dim, drug_state_dim = 32, 32
    state_dim = 64                    # inter_state_dim = 8

    root = jax.random.PRNGKey(0)
    k_cell, k_drug, k_dose, k_model = jax.random.split(root, 4)
    cell_data = jax.random.normal(k_cell, (batch, cell_input_dim), jnp.float32)
    drug_data = jax.random.normal(k_drug, (batch, drug_input_dim), jnp.float32)
    dose = jax.random.uniform(k_dose, (batch, 1), jnp.float32)

    model = init_model(k_model, cell_input_dim, drug_input_dim,
                       cell_state_dim, drug_state_dim, state_dim)
    w_slab, misc = build_kernel_params(model)

    out = simple_uno_forward(cell_data, drug_data, dose, w_slab, misc)
    out = jax.block_until_ready(out)

    ref = reference_forward(cell_data, drug_data, dose, model)
    assert out.shape == (batch, 1), out.shape
    # bf16 matmul inputs -> loosened tolerance vs. the f32 reference.
    assert jnp.allclose(out, ref, atol=2e-2, rtol=2e-2), (
        float(jnp.max(jnp.abs(out - ref))))

    print("KERNEL_OK")
</pallas_src>

<mosaic_0001>
module attributes {stable_mosaic.version = 11 : i64} {
  func.func @simple_uno_kernel(%arg0: i32, %arg1: memref<128x128xbf16, #tpu.memory_space<vmem>>, %arg2: memref<128x1xf32, #tpu.memory_space<vmem>>, %arg3: memref<8x128x64xbf16, #tpu.memory_space<vmem>>, %arg4: memref<11x64xf32, #tpu.memory_space<vmem>>, %arg5: memref<1x1x128xf32, #tpu.memory_space<vmem>>) attributes {dimension_semantics = [#tpu.dimension_semantics<parallel>], iteration_bounds = array<i64: 2>, scalar_prefetch = 0 : i64, scratch_operands = 0 : i64, tpu.core_type = #tpu.core_type<tc>, window_params = [{transform_indices = @transform_0, window_bounds = array<i64: 128, 128>}, {transform_indices = @transform_1, window_bounds = array<i64: 128, 1>}, {pipeline_mode = #tpu.pipeline_mode<synchronous>, transform_indices = @transform_2, window_bounds = array<i64: 8, 128, 64>}, {pipeline_mode = #tpu.pipeline_mode<synchronous>, transform_indices = @transform_3, window_bounds = array<i64: 11, 64>}, {transform_indices = @transform_4, window_bounds = array<i64: 1, 1, 128>}]} {
    %c0 = arith.constant 0 : index
    %c0_0 = arith.constant 0 : index
    %0 = vector.load %arg1[%c0, %c0_0] : memref<128x128xbf16, #tpu.memory_space<vmem>>, vector<128x128xbf16>
    %c0_1 = arith.constant 0 : index
    %c0_2 = arith.constant 0 : index
    %c0_3 = arith.constant 0 : index
    %1 = vector.load %arg3[%c0_1, %c0_2, %c0_3] : memref<8x128x64xbf16, #tpu.memory_space<vmem>>, vector<1x128x64xbf16>
    %2 = vector.shape_cast %1 : vector<1x128x64xbf16> to vector<128x64xbf16>
    %cst = arith.constant dense<0.000000e+00> : vector<128x64xf32>
    %3 = tpu.matmul %0, %2, %cst {dimension_numbers = #tpu.dot_dimension_numbers<[1], [0], [0], [1], [0, 0, 1, 1], [], []>} : vector<128x128xbf16>, vector<128x64xbf16>, vector<128x64xf32> -> vector<128x64xf32>
    %c0_4 = arith.constant 0 : index
    %c0_5 = arith.constant 0 : index
    %4 = vector.load %arg4[%c0_4, %c0_5] : memref<11x64xf32, #tpu.memory_space<vmem>>, vector<1x64xf32>
    %5 = vector.shape_cast %4 : vector<1x64xf32> to vector<64xf32>
    %6 = vector.shape_cast %5 : vector<64xf32> to vector<1x64xf32>
    %7 = vector.broadcast %6 : vector<1x64xf32> to vector<128x64xf32>
    %8 = arith.addf %3, %7 : vector<128x64xf32>
    %cst_6 = arith.constant 0.000000e+00 : f32
    %9 = vector.broadcast %cst_6 : f32 to vector<128x64xf32>
    %10 = arith.maximumf %8, %9 : vector<128x64xf32>
    %11 = arith.truncf %10 : vector<128x64xf32> to vector<128x64xbf16>
    %c1 = arith.constant 1 : index
    %c0_7 = arith.constant 0 : index
    %c0_8 = arith.constant 0 : index
    %12 = vector.load %arg3[%c1, %c0_7, %c0_8] : memref<8x128x64xbf16, #tpu.memory_space<vmem>>, vector<1x64x64xbf16>
    %13 = vector.shape_cast %12 : vector<1x64x64xbf16> to vector<64x64xbf16>
    %cst_9 = arith.constant dense<0.000000e+00> : vector<128x64xf32>
    %14 = tpu.matmul %11, %13, %cst_9 {dimension_numbers = #tpu.dot_dimension_numbers<[1], [0], [0], [1], [0, 0, 1, 1], [], []>} : vector<128x64xbf16>, vector<64x64xbf16>, vector<128x64xf32> -> vector<128x64xf32>
    %c1_10 = arith.constant 1 : index
    %c0_11 = arith.constant 0 : index
    %15 = vector.load %arg4[%c1_10, %c0_11] : memref<11x64xf32, #tpu.memory_space<vmem>>, vector<1x64xf32>
    %16 = vector.shape_cast %15 : vector<1x64xf32> to vector<64xf32>
    %17 = vector.shape_cast %16 : vector<64xf32> to vector<1x64xf32>
    %18 = vector.broadcast %17 : vector<1x64xf32> to vector<128x64xf32>
    %19 = arith.addf %14, %18 : vector<128x64xf32>
    %cst_12 = arith.constant 0.000000e+00 : f32
    %20 = vector.broadcast %cst_12 : f32 to vector<128x64xf32>
    %21 = arith.maximumf %19, %20 : vector<128x64xf32>
    %22 = arith.truncf %21 : vector<128x64xf32> to vector<128x64xbf16>
    %c2 = arith.constant 2 : index
    %c0_13 = arith.constant 0 : index
    %c0_14 = arith.constant 0 : index
    %23 = vector.load %arg3[%c2, %c0_13, %c0_14] : memref<8x128x64xbf16, #tpu.memory_space<vmem>>, vector<1x64x64xbf16>
    %24 = vector.shape_cast %23 : vector<1x64x64xbf16> to vector<64x64xbf16>
    %cst_15 = arith.constant dense<0.000000e+00> : vector<128x64xf32>
    %25 = tpu.matmul %22, %24, %cst_15 {dimension_numbers = #tpu.dot_dimension_numbers<[1], [0], [0], [1], [0, 0, 1, 1], [], []>} : vector<128x64xbf16>, vector<64x64xbf16>, vector<128x64xf32> -> vector<128x64xf32>
    %c2_16 = arith.constant 2 : index
    %c0_17 = arith.constant 0 : index
    %26 = vector.load %arg4[%c2_16, %c0_17] : memref<11x64xf32, #tpu.memory_space<vmem>>, vector<1x64xf32>
    %27 = vector.shape_cast %26 : vector<1x64xf32> to vector<64xf32>
    %28 = vector.shape_cast %27 : vector<64xf32> to vector<1x64xf32>
    %29 = vector.broadcast %28 : vector<1x64xf32> to vector<128x64xf32>
    %30 = arith.addf %25, %29 : vector<128x64xf32>
    %cst_18 = arith.constant 0.000000e+00 : f32
    %31 = vector.broadcast %cst_18 : f32 to vector<128x64xf32>
    %32 = arith.maximumf %30, %31 : vector<128x64xf32>
    %33 = arith.truncf %32 : vector<128x64xf32> to vector<128x64xbf16>
    %c3 = arith.constant 3 : index
    %c0_19 = arith.constant 0 : index
    %c0_20 = arith.constant 0 : index
    %34 = vector.load %arg3[%c3, %c0_19, %c0_20] : memref<8x128x64xbf16, #tpu.memory_space<vmem>>, vector<1x64x64xbf16>
    %35 = vector.shape_cast %34 : vector<1x64x64xbf16> to vector<64x64xbf16>
    %cst_21 = arith.constant dense<0.000000e+00> : vector<128x64xf32>
    %36 = tpu.matmul %33, %35, %cst_21 {dimension_numbers = #tpu.dot_dimension_numbers<[1], [0], [0], [1], [0, 0, 1, 1], [], []>} : vector<128x64xbf16>, vector<64x64xbf16>, vector<128x64xf32> -> vector<128x64xf32>
    %c0_22 = arith.constant 0 : index
    %c0_23 = arith.constant 0 : index
    %37 = vector.load %arg2[%c0_22, %c0_23] : memref<128x1xf32, #tpu.memory_space<vmem>>, vector<128x1xf32>
    %c8 = arith.constant 8 : index
    %c0_24 = arith.constant 0 : index
    %38 = vector.load %arg4[%c8, %c0_24] : memref<11x64xf32, #tpu.memory_space<vmem>>, vector<1x64xf32>
    %39 = vector.shape_cast %38 : vector<1x64xf32> to vector<64xf32>
    %40 = vector.shape_cast %39 : vector<64xf32> to vector<1x64xf32>
    %41 = vector.broadcast %37 : vector<128x1xf32> to vector<128x64xf32>
    %42 = vector.broadcast %40 : vector<1x64xf32> to vector<128x64xf32>
    %43 = arith.mulf %41, %42 : vector<128x64xf32>
    %44 = arith.addf %36, %43 : vector<128x64xf32>
    %c3_25 = arith.constant 3 : index
    %c0_26 = arith.constant 0 : index
    %45 = vector.load %arg4[%c3_25, %c0_26] : memref<11x64xf32, #tpu.memory_space<vmem>>, vector<1x64xf32>
    %46 = vector.shape_cast %45 : vector<1x64xf32> to vector<64xf32>
    %47 = vector.shape_cast %46 : vector<64xf32> to vector<1x64xf32>
    %48 = vector.broadcast %47 : vector<1x64xf32> to vector<128x64xf32>
    %49 = arith.addf %44, %48 : vector<128x64xf32>
    %cst_27 = arith.constant 0.000000e+00 : f32
    %50 = vector.broadcast %cst_27 : f32 to vector<128x64xf32>
    %51 = arith.maximumf %49, %50 : vector<128x64xf32>
    %52 = arith.truncf %51 : vector<128x64xf32> to vector<128x64xbf16>
    %c4 = arith.constant 4 : index
    %c0_28 = arith.constant 0 : index
    %c0_29 = arith.constant 0 : index
    %53 = vector.load %arg3[%c4, %c0_28, %c0_29] : memref<8x128x64xbf16, #tpu.memory_space<vmem>>, vector<1x64x64xbf16>
    %54 = vector.shape_cast %53 : vector<1x64x64xbf16> to vector<64x64xbf16>
    %cst_30 = arith.constant dense<0.000000e+00> : vector<128x64xf32>
    %55 = tpu.matmul %52, %54, %cst_30 {dimension_numbers = #tpu.dot_dimension_numbers<[1], [0], [0], [1], [0, 0, 1, 1], [], []>} : vector<128x64xbf16>, vector<64x64xbf16>, vector<128x64xf32> -> vector<128x64xf32>
    %c4_31 = arith.constant 4 : index
    %c0_32 = arith.constant 0 : index
    %56 = vector.load %arg4[%c4_31, %c0_32] : memref<11x64xf32, #tpu.memory_space<vmem>>, vector<1x64xf32>
    %57 = vector.shape_cast %56 : vector<1x64xf32> to vector<64xf32>
    %58 = vector.shape_cast %57 : vector<64xf32> to vector<1x64xf32>
    %59 = vector.broadcast %58 : vector<1x64xf32> to vector<128x64xf32>
    %60 = arith.addf %55, %59 : vector<128x64xf32>
    %cst_33 = arith.constant 0.000000e+00 : f32
    %61 = vector.broadcast %cst_33 : f32 to vector<128x64xf32>
    %62 = arith.maximumf %60, %61 : vector<128x64xf32>
    %63 = arith.truncf %62 : vector<128x64xf32> to vector<128x64xbf16>
    %c5 = arith.constant 5 : index
    %c0_34 = arith.constant 0 : index
    %c0_35 = arith.constant 0 : index
    %64 = vector.load %arg3[%c5, %c0_34, %c0_35] : memref<8x128x64xbf16, #tpu.memory_space<vmem>>, vector<1x64x64xbf16>
    %65 = vector.shape_cast %64 : vector<1x64x64xbf16> to vector<64x64xbf16>
    %cst_36 = arith.constant dense<0.000000e+00> : vector<128x64xf32>
    %66 = tpu.matmul %63, %65, %cst_36 {dimension_numbers = #tpu.dot_dimension_numbers<[1], [0], [0], [1], [0, 0, 1, 1], [], []>} : vector<128x64xbf16>, vector<64x64xbf16>, vector<128x64xf32> -> vector<128x64xf32>
    %c5_37 = arith.constant 5 : index
    %c0_38 = arith.constant 0 : index
    %67 = vector.load %arg4[%c5_37, %c0_38] : memref<11x64xf32, #tpu.memory_space<vmem>>, vector<1x64xf32>
    %68 = vector.shape_cast %67 : vector<1x64xf32> to vector<64xf32>
    %69 = vector.shape_cast %68 : vector<64xf32> to vector<1x64xf32>
    %70 = vector.broadcast %69 : vector<1x64xf32> to vector<128x64xf32>
    %71 = arith.addf %66, %70 : vector<128x64xf32>
    %cst_39 = arith.constant 0.000000e+00 : f32
    %72 = vector.broadcast %cst_39 : f32 to vector<128x64xf32>
    %73 = arith.maximumf %71, %72 : vector<128x64xf32>
    %74 = arith.truncf %73 : vector<128x64xf32> to vector<128x64xbf16>
    %c6 = arith.constant 6 : index
    %c0_40 = arith.constant 0 : index
    %c0_41 = arith.constant 0 : index
    %75 = vector.load %arg3[%c6, %c0_40, %c0_41] : memref<8x128x64xbf16, #tpu.memory_space<vmem>>, vector<1x64x64xbf16>
    %76 = vector.shape_cast %75 : vector<1x64x64xbf16> to vector<64x64xbf16>
    %cst_42 = arith.constant dense<0.000000e+00> : vector<128x64xf32>
    %77 = tpu.matmul %74, %76, %cst_42 {dimension_numbers = #tpu.dot_dimension_numbers<[1], [0], [0], [1], [0, 0, 1, 1], [], []>} : vector<128x64xbf16>, vector<64x64xbf16>, vector<128x64xf32> -> vector<128x64xf32>
    %c6_43 = arith.constant 6 : index
    %c0_44 = arith.constant 0 : index
    %78 = vector.load %arg4[%c6_43, %c0_44] : memref<11x64xf32, #tpu.memory_space<vmem>>, vector<1x64xf32>
    %79 = vector.shape_cast %78 : vector<1x64xf32> to vector<64xf32>
    %80 = vector.shape_cast %79 : vector<64xf32> to vector<1x64xf32>
    %81 = vector.broadcast %80 : vector<1x64xf32> to vector<128x64xf32>
    %82 = arith.addf %77, %81 : vector<128x64xf32>
    %cst_45 = arith.constant 0.000000e+00 : f32
    %83 = vector.broadcast %cst_45 : f32 to vector<128x64xf32>
    %84 = arith.maximumf %82, %83 : vector<128x64xf32>
    %85 = arith.truncf %84 : vector<128x64xf32> to vector<128x64xbf16>
    %c7 = arith.constant 7 : index
    %c0_46 = arith.constant 0 : index
    %c0_47 = arith.constant 0 : index
    %86 = vector.load %arg3[%c7, %c0_46, %c0_47] : memref<8x128x64xbf16, #tpu.memory_space<vmem>>, vector<1x64x64xbf16>
    %87 = vector.shape_cast %86 : vector<1x64x64xbf16> to vector<64x64xbf16>
    %cst_48 = arith.constant dense<0.000000e+00> : vector<128x64xf32>
    %88 = tpu.matmul %85, %87, %cst_48 {dimension_numbers = #tpu.dot_dimension_numbers<[1], [0], [0], [1], [0, 0, 1, 1], [], []>} : vector<128x64xbf16>, vector<64x64xbf16>, vector<128x64xf32> -> vector<128x64xf32>
    %c7_49 = arith.constant 7 : index
    %c0_50 = arith.constant 0 : index
    %89 = vector.load %arg4[%c7_49, %c0_50] : memref<11x64xf32, #tpu.memory_space<vmem>>, vector<1x64xf32>
    %90 = vector.shape_cast %89 : vector<1x64xf32> to vector<64xf32>
    %91 = vector.shape_cast %90 : vector<64xf32> to vector<1x64xf32>
    %92 = vector.broadcast %91 : vector<1x64xf32> to vector<128x64xf32>
    %93 = arith.addf %88, %92 : vector<128x64xf32>
    %cst_51 = arith.constant 0.000000e+00 : f32
    %94 = vector.broadcast %cst_51 : f32 to vector<128x64xf32>
    %95 = arith.maximumf %93, %94 : vector<128x64xf32>
    %c9 = arith.constant 9 : index
    %c0_52 = arith.constant 0 : index
    %96 = vector.load %arg4[%c9, %c0_52] : memref<11x64xf32, #tpu.memory_space<vmem>>, vector<1x64xf32>
    %97 = vector.shape_cast %96 : vector<1x64xf32> to vector<64xf32>
    %98 = vector.shape_cast %97 : vector<64xf32> to vector<1x64xf32>
    %99 = vector.broadcast %98 : vector<1x64xf32> to vector<128x64xf32>
    %100 = arith.mulf %95, %99 : vector<128x64xf32>
    %c10 = arith.constant 10 : index
    %c0_53 = arith.constant 0 : index
    %101 = vector.load %arg4[%c10, %c0_53] : memref<11x64xf32, #tpu.memory_space<vmem>>, vector<1x64xf32>
    %102 = vector.shape_cast %101 : vector<1x64xf32> to vector<64xf32>
    %103 = vector.shape_cast %102 : vector<64xf32> to vector<1x64xf32>
    %104 = vector.broadcast %103 : vector<1x64xf32> to vector<128x64xf32>
    %105 = arith.addf %100, %104 : vector<128x64xf32>
    %cst_54 = arith.constant dense<0.000000e+00> : vector<128xf32>
    %106 = vector.multi_reduction <add>, %105, %cst_54 [1] : vector<128x64xf32> to vector<128xf32>
    %107 = vector.shape_cast %106 : vector<128xf32> to vector<128x1xf32>
    %108 = tpu.transpose %107, [1, 0] : vector<128x1xf32> -> vector<1x128xf32>
    %109 = arith.negf %108 : vector<1x128xf32>
    %110 = math.exp %109 : vector<1x128xf32>
    %cst_55 = arith.constant 1.000000e+00 : f32
    %111 = vector.broadcast %cst_55 : f32 to vector<1x128xf32>
    %112 = arith.addf %111, %110 : vector<1x128xf32>
    %113 = arith.divf %111, %112 : vector<1x128xf32>
    %114 = vector.shape_cast %113 : vector<1x128xf32> to vector<1x1x128xf32>
    %c0_56 = arith.constant 0 : index
    %c0_57 = arith.constant 0 : index
    %c0_58 = arith.constant 0 : index
    %115 = vector.load %arg5[%c0_56, %c0_57, %c0_58] : memref<1x1x128xf32, #tpu.memory_space<vmem>>, vector<1x1x128xf32>
    tpu.vector_store %arg5[%c0_56, %c0_57, %c0_58], %114 {strides = array<i32>} : memref<1x1x128xf32, #tpu.memory_space<vmem>>, vector<1x1x128xf32>,
    return
  }
  func.func @transform_0(%arg0: i32) -> (i32, i32) {
    %c0_i32 = arith.constant 0 : i32
    %c0_i32_0 = arith.constant 0 : i32
    return %arg0, %c0_i32 : i32, i32
  }
  func.func @transform_1(%arg0: i32) -> (i32, i32) {
    %c0_i32 = arith.constant 0 : i32
    %c0_i32_0 = arith.constant 0 : i32
    return %arg0, %c0_i32 : i32, i32
  }
  func.func @transform_2(%arg0: i32) -> (i32, i32, i32) {
    %c0_i32 = arith.constant 0 : i32
    %c0_i32_0 = arith.constant 0 : i32
    %c0_i32_1 = arith.constant 0 : i32
    %c0_i32_2 = arith.constant 0 : i32
    return %c0_i32, %c0_i32_0, %c0_i32_1 : i32, i32, i32
  }
  func.func @transform_3(%arg0: i32) -> (i32, i32) {
    %c0_i32 = arith.constant 0 : i32
    %c0_i32_0 = arith.constant 0 : i32
    %c0_i32_1 = arith.constant 0 : i32
    return %c0_i32, %c0_i32_0 : i32, i32
  }
  func.func @transform_4(%arg0: i32) -> (i32, i32, i32) {
    %c0_i32 = arith.constant 0 : i32
    %c0_i32_0 = arith.constant 0 : i32
    %c0_i32_1 = arith.constant 0 : i32
    return %arg0, %c0_i32, %c0_i32_0 : i32, i32, i32
  }
}

</mosaic_0001>

<bundles_post_ra>
// kernel: tpu_custom_call.1
= control target key start
LH: loop header
LB: loop body
LE: loop exit
PB: predicated region body
PF: predicated region fallthrough
CT: control target
= control target key end

     0   :  { %9 = vsyncpa [#allocation3], 0  ;;  %s3204_s0 = inlined_call_operand.vmem [shape: bf16[256,128], index: 0, kind: input, shape index: {}]   ;;  %s3205_s1 = inlined_call_operand.vmem [shape: f32[256,1], index: 1, kind: input, shape index: {}]   ;;  %s3206_s2 = inlined_call_operand.vmem [shape: bf16[8,128,64], index: 2, kind: input, shape index: {}]   ;;  %s3207_s3 = inlined_call_operand.vmem [shape: f32[11,64], index: 3, kind: input, shape index: {}]   ;;  %s3208_s4 = inlined_call_operand.hbm [shape: f32[2,1,128], index: 4, kind: output, shape index: {}]  }
   0x1   :  { %11 = vsyncpa [#allocation3 + $0x1], 0  ;;  %s2756_s15 = smov 0   ;;  %s2758_s16 = smov 0  }
   0x2   :  { %s2760_s17 = smov 0   ;;  %s2762_s18 = smov 0  }
   0x3 LB: > { %s2089_s19 = sadd.s32 4294967295, %s2727_s18   ;;  %s2090_s20 = sadd.s32 4294967294, %s2727_s18   ;;  %s2727_s18 = sphi %s2762_s18, %s3214_s18   ;;  %s2723_s17 = sphi %s2760_s17, %s3213_s17   ;;  %s2719_s16 = sphi %s2758_s16, %s3212_s16   ;;  %s2715_s15 = sphi %s2756_s15, %s3211_s15  }
   0x4   : > { %s2779_s21 = sadd.s32 1, %s2727_s18   ;;  %s118_s22 = sadd.s32 1, %s2723_s17 }
   0x5   : > { %s115_s23 = ssub.s32 %s2727_s18, %s2779_s21  ;;  %p128_p0 = scmp.ne.s32.totalorder %s2723_s17, %s2719_s16 }
   0x6   : > { %p116_p1 = scmp.eq.s32.totalorder %s115_s23, 0  ;;  %p129_p2 = scmp.eq.s32.totalorder %s2089_s19, 1 }
   0x7   : > { %p134_p3 = scmp.ne.s32.totalorder %s2719_s16, %s2715_s15  ;;  %p135_p4 = scmp.eq.s32.totalorder %s2090_s20, 1 }
   0x8   : > { %s2789_s24 = scalar_select %p116_p1, %s2723_s17, %s118_s22  }
   0x9   : > { %p2791_p5 = por %p129_p2, %p128_p0  ;;  %p2795_p6 = por %p135_p4, %p134_p3 }
   0xa   : > { %p2093_p7 = scmp.ge.s32.totalorder %s2727_s18, 1  ;;  %p177_p8 = scmp.lt.s32.totalorder %s2727_s18, 3 }
   0xc   : > { %p178_p9 = pnand %p2093_p7, %p177_p8 }
   0xd   : > { %s2804_s29 = sshll.u32 (!%p178_p9), %s2089_s19, 4  ;;  %s2730_s14 = smov (!%p178_p9), [#allocation2]  }
   0xe   : > { %181 = sbr.rel (%p178_p9) target bundleno = 2008 (0x7d8), region = 36  ;;  %p208_p10 = scmp.lt.s32.totalorder (!%p178_p9), %s2804_s29, 31 }
   0xf   : > { %s3169_s10 = scalar_lea.hbm (!%p178_p9), %s3208_s4, %s2804_s29  ;;  %s2671_s19 = sshll.u32 (!%p178_p9), %s2730_s14, 4  ;;  %s2672_s19 = int_to_ptr.vmem [resolvable:$false] %s2671_s19 }
  0x13   : > { %v2619_v0 = vld [vmem:[%s3206_s2 + $0x38] sm:$0xff]   ;;  %v2620_v1 = vld [vmem:[%s3206_s2 + $0x30] sm:$0xff]   ;;  %s2811_s6 = scalar_select %p208_p10, %s2804_s29, 31  ;;  %v2621_v2 = vld [vmem:[%s3206_s2 + $0x28] sm:$0xff]   ;;  %vm512_vm0 = vcmask 523264  }
  0x14   : > { %2369 = vmatprep.subr.bf16.mxu0 %v2619_v0  ;;  %v2622_v3 = vld [vmem:[%s3206_s2 + $0x20] sm:$0xff]   ;;  %v2623_v5 = vld [vmem:[%s3206_s2 + $0x18] sm:$0xff]   ;;  %v2624_v6 = vld [vmem:[%s3206_s2 + $0x10] sm:$0xff]  }
  0x15   : > { %2370 = vmatpush3.bf16.msra.mxu0 %v2619_v0  ;;  %s2095_s9 = sshll.u32 %s2811_s6, 2  ;;  %v2635_v7 = vld [vmem:[%s3206_s2 + $0x58] sm:$0xff]   ;;  %v2625_v8 = vld [vmem:[%s3206_s2 + $0x8] sm:$0xff]   ;;  %v2626_v9 = vld [vmem:[%s3206_s2] sm:$0xff]   ;;  %s2097_s27 = sshll.u32 %s2811_s6, 3 }
  0x16   : > { %2371 = vmatprep.subr.bf16.mxu0 %v2620_v1  ;;  %s2820_s12 = scalar_lea.vmem %s3204_s0, %s2095_s9  ;;  %2401 = vmatprep.subr.bf16.mxu1 %v2635_v7  ;;  %v2636_v17 = vld [vmem:[%s3206_s2 + $0x50] sm:$0xff]   ;;  %v2637_v18 = vld [vmem:[%s3206_s2 + $0x48] sm:$0xff]   ;;  %v2638_v19 = vld [vmem:[%s3206_s2 + $0x40] sm:$0xff]   ;;  %s2925_s5 = scalar_lea.vmem %s3205_s1, %s2097_s27 }
  0x17   : > { %v2627_v4 = vld [vmem:[%s2820_s12] sm:$0xff]   ;;  %2402 = vmatpush3.bf16.msra.mxu1 %v2635_v7  ;;  %v2628_v10 = vld [vmem:[%s2820_s12 + $0x8] sm:$0xff]   ;;  %v2629_v11 = vld [vmem:[%s2820_s12 + $0x10] sm:$0xff]  }
  0x18   : > { %2385 = vmatprep.mubr.bf16.mxu0 %v2627_v4  ;;  %v2630_v12 = vld [vmem:[%s2820_s12 + $0x18] sm:$0xff]   ;;  %v2631_v13 = vld [vmem:[%s2820_s12 + $0x20] sm:$0xff]   ;;  %v2632_v14 = vld [vmem:[%s2820_s12 + $0x28] sm:$0xff]   ;;  %2403 = vmatprep.subr.bf16.mxu1 %v2636_v17 }
  0x19   : > { %2372 = vmatpush3.bf16.msra.mxu0 %v2620_v1  ;;  %v2633_v15 = vld [vmem:[%s2820_s12 + $0x30] sm:$0xff]   ;;  %v2634_v16 = vld [vmem:[%s2820_s12 + $0x38] sm:$0xff]   ;;  %v2863_v23 = vld [vmem:[%s3207_s3] ss:$0 sm:$0xff]  ;;  %s2673_s12 = scalar_lea.vmem %s2672_s19, 32 }
  0x1a   : > { %2373 = vmatprep.subr.bf16.mxu0 %v2621_v2  ;;  %v2639_v20 = vld [vmem:[%s3206_s2 + $0x98] sm:$0xff]   ;;  %v2640_v41 = vld [vmem:[%s3206_s2 + $0x90] sm:$0xff]   ;;  %v2641_v49 = vld [vmem:[%s3206_s2 + $0x88] sm:$0xff]  }
  0x1b   : > { %2404 = vmatpush3.bf16.msra.mxu1 %v2636_v17  ;;  %v2643_v17 = vld [vmem:[%s3206_s2 + $0xd8] sm:$0xff]  }
  0x1c   : > { %2405 = vmatprep.subr.bf16.mxu1 %v2637_v18 }
  0x1d   : > { %2374 = vmatpush3.bf16.msra.mxu0 %v2621_v2 }
  0x1e   : > { %2375 = vmatprep.subr.bf16.mxu0 %v2622_v3 }
  0x1f   : > { %2406 = vmatpush3.bf16.msra.mxu1 %v2637_v18  ;;  %v2644_v18 = vld [vmem:[%s3206_s2 + $0xd0] sm:$0xff]  }
  0x20   : > { %2407 = vmatprep.subr.bf16.mxu1 %v2638_v19 }
  0x21   : > { %2376 = vmatpush3.bf16.msra.mxu0 %v2622_v3 }
  0x22   : > { %2377 = vmatprep.subr.bf16.mxu0 %v2623_v5 }
  0x23   : > { %2408 = vmatpush3.bf16.msra.mxu1 %v2638_v19  ;;  %v2645_v19 = vld [vmem:[%s3206_s2 + $0xc8] sm:$0xff]  }
  0x24   : > { %2425 = vmatprep.subr.bf16.mxu1 %v2639_v20 }
  0x25   : > { %2378 = vmatpush3.bf16.msra.mxu0 %v2623_v5 }
  0x26   : > { %2379 = vmatprep.subr.bf16.mxu0 %v2624_v6 }
  0x29   : > { %2380 = vmatpush3.bf16.msra.mxu0 %v2624_v6 }
  0x2a   : > { %2381 = vmatprep.subr.bf16.mxu0 %v2625_v8 }
  0x2d   : > { %2382 = vmatpush3.bf16.msra.mxu0 %v2625_v8 }
  0x2e   : > { %2383 = vmatprep.subr.bf16.mxu0 %v2626_v9 }
  0x31   : > { %2384 = vmatpush3.bf16.msra.mxu0 %v2626_v9 }
  0x32   : > { %2449 = vmatprep.subr.bf16.mxu0 %v2643_v17 }
  0x34   : > { %2386 = vmatmul.mubr.bf16.vlgmr.msra.gmra.mxu0 %v2628_v10 }
  0x35   : > { %2389 = vmatprep.mubr.bf16.mxu0 %v2629_v11  ;;  %2450 = vmatpush3.bf16.msra.mxu0 %v2643_v17  ;;  %v851_v17 = vld [vmem:[%s2925_s5 + $0x8] sm:$0xff] }
  0x36   : > { %2451 = vmatprep.subr.bf16.mxu0 %v2644_v18 }
  0x39   : > { %2452 = vmatpush3.bf16.msra.mxu0 %v2644_v18  ;;  %v853_v18 = vld [vmem:[%s2925_s5 + $0x18] sm:$0xff] }
  0x3a   : > { %2453 = vmatprep.subr.bf16.mxu0 %v2645_v19 }
  0x3c   : > { %2390 = vmatmul.mubr.bf16.gmra.mxu0 %v2630_v12 }
  0x3d   : > { %2393 = vmatprep.mubr.bf16.mxu0 %v2631_v13  ;;  %2454 = vmatpush3.bf16.msra.mxu0 %v2645_v19  ;;  %v2647_v19 = vld [vmem:[%s3206_s2 + $0x118] sm:$0xff]  }
  0x44   : > { %2394 = vmatmul.mubr.bf16.gmra.mxu0 %v2632_v14 }
  0x45   : > { %2397 = vmatprep.mubr.bf16.mxu0 %v2633_v15 }
  0x4c   : > { %2398 = vmatmul.mubr.bf16.gmra.mxu0 %v2634_v16  ;;  %v2642_v16 = vld [vmem:[%s3206_s2 + $0x80] sm:$0xff]  }
  0xf4   : > { %v2387_v21 = vpop.f32.mrf.mxu0 }
  0xf5   : > { %v396_v27 = vadd.f32 %v2387_v21, %v2863_v23 }
  0xf6   : > { %v387_v22 = vpop.f32.mrf.mxu0 }
  0xf7   : > { %v388_v25 = vadd.f32 %v2863_v23, %v387_v22  ;;  %v452_v34 = vmax.f32 %v396_v27, 0.0  ;;  %v2123_v22 = vld [vmem:[%s3207_s3 + $0x1] ss:$0 sm:$0xff] }
  0xf8   : > { %v2388_v24 = vpop.f32.mrf.mxu0 }
  0xf9   : > { %v399_v26 = vadd.f32 %v2388_v24, %v2863_v23  ;;  %v450_v32 = vmax.f32 %v388_v25, 0.0 }
  0xfa   : > { %v390_v28 = vpop.f32.mrf.mxu0 }
  0xfb   : > { %v391_v29 = vadd.f32 %v2863_v23, %v390_v28  ;;  %v453_v30 = vmax.f32 %v399_v26, 0.0 }
  0xfc   : > { %v2391_v31 = vpop.f32.mrf.mxu0 }
  0xfd   : > { %v451_v33 = vmax.f32 %v391_v29, 0.0  ;;  %v412_v35 = vadd.f32 %v2391_v31, %v2863_v23  ;;  %v467_v39 = vpack.c.bf16 %v453_v30, %v452_v34 }
  0xfe   : > { %v403_v36 = vpop.f32.mrf.mxu0 }
  0xff   : > { %v404_v37 = vadd.f32 %v2863_v23, %v403_v36  ;;  %v466_v38 = vpack.c.bf16 %v451_v33, %v450_v32  ;;  %v456_v43 = vmax.f32 %v412_v35, 0.0 }
 0x100   : > { %v2392_v40 = vpop.f32.mrf.mxu0 }
 0x101   : > { %v415_v42 = vadd.f32 %v2392_v40, %v2863_v23  ;;  %2409 = vmatprep.mubr.msk.bf16.mxu1 %vm512_vm0, %v466_v38  ;;  %v454_v45 = vmax.f32 %v404_v37, 0.0 }
 0x102   : > { %v406_v44 = vpop.f32.mrf.mxu0  ;;  %2410 = vmatmul.mubr.msk.bf16.vlgmr.msra.gmra.mxu1 %vm512_vm0, %v467_v39 }
 0x103   : > { %v457_v46 = vmax.f32 %v415_v42, 0.0  ;;  %v407_v47 = vadd.f32 %v2863_v23, %v406_v44  ;;  %2426 = vmatpush3.bf16.msra.mxu1 %v2639_v20 }
 0x104   : > { %v2395_v48 = vpop.f32.mrf.mxu0  ;;  %2427 = vmatprep.subr.bf16.mxu1 %v2640_v41 }
 0x105   : > { %v455_v50 = vmax.f32 %v407_v47, 0.0  ;;  %v469_v51 = vpack.c.bf16 %v457_v46, %v456_v43  ;;  %v428_v52 = vadd.f32 %v2395_v48, %v2863_v23 }
 0x106   : > { %v419_v53 = vpop.f32.mrf.mxu0 }
 0x107   : > { %v468_v54 = vpack.c.bf16 %v455_v50, %v454_v45  ;;  %v420_v55 = vadd.f32 %v2863_v23, %v419_v53  ;;  %2428 = vmatpush3.bf16.msra.mxu1 %v2640_v41  ;;  %v460_v58 = vmax.f32 %v428_v52, 0.0 }
 0x108   : > { %v2396_v56 = vpop.f32.mrf.mxu0  ;;  %2429 = vmatprep.subr.bf16.mxu1 %v2641_v49 }
 0x109   : > { %v431_v57 = vadd.f32 %v2396_v56, %v2863_v23  ;;  %2413 = vmatprep.mubr.msk.bf16.mxu1 %vm512_vm0, %v468_v54  ;;  %v458_v60 = vmax.f32 %v420_v55, 0.0 }
 0x10a   : > { %v422_v59 = vpop.f32.mrf.mxu0  ;;  %2414 = vmatmul.mubr.msk.bf16.gmra.mxu1 %vm512_vm0, %v469_v51 }
 0x10b   : > { %v461_v61 = vmax.f32 %v431_v57, 0.0  ;;  %v423_v62 = vadd.f32 %v2863_v23, %v422_v59  ;;  %2430 = vmatpush3.bf16.msra.mxu1 %v2641_v49 }
 0x10c   : > { %v2399_v63 = vpop.f32.mrf.mxu0  ;;  %2431 = vmatprep.subr.bf16.mxu1 %v2642_v16 }
 0x10d   : > { %v459_v0 = vmax.f32 %v423_v62, 0.0  ;;  %v471_v1 = vpack.c.bf16 %v461_v61, %v460_v58  ;;  %v444_v2 = vadd.f32 %v2399_v63, %v2863_v23 }
 0x10e   : > { %v435_v3 = vpop.f32.mrf.mxu0 }
 0x10f   : > { %v470_v4 = vpack.c.bf16 %v459_v0, %v458_v60  ;;  %v436_v5 = vadd.f32 %v2863_v23, %v435_v3  ;;  %v464_v8 = vmax.f32 %v444_v2, 0.0  ;;  %2432 = vmatpush3.bf16.msra.mxu1 %v2642_v16  ;;  %v852_v16 = vld [vmem:[%s2925_s5 + $0x10] sm:$0xff] }
 0x110   : > { %v2400_v6 = vpop.f32.mrf.mxu0  ;;  %2473 = vmatprep.subr.bf16.mxu1 %v2647_v19 }
 0x111   : > { %v447_v7 = vadd.f32 %v2400_v6, %v2863_v23  ;;  %2417 = vmatprep.mubr.msk.bf16.mxu1 %vm512_vm0, %v470_v4  ;;  %v462_v10 = vmax.f32 %v436_v5, 0.0 }
 0x112   : > { %v438_v9 = vpop.f32.mrf.mxu0  ;;  %2418 = vmatmul.mubr.msk.bf16.gmra.mxu1 %vm512_vm0, %v471_v1 }
 0x113   : > { %v465_v11 = vmax.f32 %v447_v7, 0.0  ;;  %v439_v12 = vadd.f32 %v2863_v23, %v438_v9 }
 0x115   : > { %v463_v13 = vmax.f32 %v439_v12, 0.0  ;;  %v473_v14 = vpack.c.bf16 %v465_v11, %v464_v8 }
 0x117   : > { %v472_v15 = vpack.c.bf16 %v463_v13, %v462_v10  ;;  %v2646_v13 = vld [vmem:[%s3206_s2 + $0xc0] sm:$0xff]  }
 0x118   : > { %2455 = vmatprep.subr.bf16.mxu0 %v2646_v13 }
 0x119   : > { %2421 = vmatprep.mubr.msk.bf16.mxu1 %vm512_vm0, %v472_v15  ;;  %2456 = vmatpush3.bf16.msra.mxu0 %v2646_v13  ;;  %v850_v15 = vld [vmem:[%s2925_s5] sm:$0xff] }
 0x11a   : > { %2422 = vmatmul.mubr.msk.bf16.gmra.mxu1 %vm512_vm0, %v473_v14  ;;  %v2729_v14 = vmov 0  }
 0x11b   : > { %2617 = vset.pattern.permute.xlu0 %v2729_v14  ;;  %2618 = vset.pattern.permute.xlu1 %v2729_v14 }
 0x11c   : > { %869 = vperm.xlu0 %2617, %v850_v15   ;;  %879 = vperm.xlu1 %2618, %v852_v16  }
 0x120   : > { %874 = vperm.xlu0 %2617, %v851_v17   ;;  %884 = vperm.xlu1 %2618, %v853_v18  }
 0x1c2   : > { %v2411_v20 = vpop.f32.mrf.mxu1 }
 0x1c3   : > { %v580_v26 = vadd.f32 %v2411_v20, %v2123_v22  ;;  %v854_v20 = vld [vmem:[%s2925_s5 + $0x20] sm:$0xff] }
 0x1c4   : > { %v571_v21 = vpop.f32.mrf.mxu1  ;;  %889 = vperm.xlu0 %2617, %v854_v20  }
 0x1c5   : > { %v572_v24 = vadd.f32 %v2123_v22, %v571_v21  ;;  %v636_v33 = vmax.f32 %v580_v26, 0.0  ;;  %v855_v21 = vld [vmem:[%s2925_s5 + $0x28] sm:$0xff] }
 0x1c6   : > { %v2412_v23 = vpop.f32.mrf.mxu1  ;;  %894 = vperm.xlu1 %2618, %v855_v21   ;;  %v859_v26 = vld [vmem:[%s2925_s5 + $0x48] sm:$0xff] }
 0x1c7   : > { %v583_v25 = vadd.f32 %v2412_v23, %v2123_v22  ;;  %v634_v31 = vmax.f32 %v572_v24, 0.0  ;;  %v857_v23 = vld [vmem:[%s2925_s5 + $0x38] sm:$0xff]  ;;  %v2648_v24 = vld [vmem:[%s3206_s2 + $0x110] sm:$0xff]  }
 0x1c8   : > { %v574_v27 = vpop.f32.mrf.mxu1 }
 0x1c9   : > { %v575_v28 = vadd.f32 %v2123_v22, %v574_v27  ;;  %v637_v29 = vmax.f32 %v583_v25, 0.0  ;;  %v858_v25 = vld [vmem:[%s2925_s5 + $0x40] sm:$0xff]  ;;  %v860_v27 = vld [vmem:[%s2925_s5 + $0x50] sm:$0xff] }
 0x1ca   : > { %v2415_v30 = vpop.f32.mrf.mxu1  ;;  %904 = vperm.xlu1 %2618, %v857_v23  }
 0x1cb   : > { %v635_v32 = vmax.f32 %v575_v28, 0.0  ;;  %v651_v36 = vpack.c.bf16 %v637_v29, %v636_v33  ;;  %v596_v40 = vadd.f32 %v2415_v30, %v2123_v22  ;;  %v861_v28 = vld [vmem:[%s2925_s5 + $0x58] sm:$0xff]  ;;  %v2649_v29 = vld [vmem:[%s3206_s2 + $0x108] sm:$0xff]   ;;  %v862_v30 = vld [vmem:[%s2925_s5 + $0x60] sm:$0xff] }
 0x1cc   : > { %v587_v34 = vpop.f32.mrf.mxu1  ;;  %v865_v33 = vld [vmem:[%s2925_s5 + $0x78] sm:$0xff] }
 0x1cd   : > { %v650_v35 = vpack.c.bf16 %v635_v32, %v634_v31  ;;  %v588_v38 = vadd.f32 %v2123_v22, %v587_v34  ;;  %v640_v47 = vmax.f32 %v596_v40, 0.0  ;;  %v863_v31 = vld [vmem:[%s2925_s5 + $0x68] sm:$0xff]  ;;  %v864_v32 = vld [vmem:[%s2925_s5 + $0x70] sm:$0xff] }
 0x1ce   : > { %v2416_v37 = vpop.f32.mrf.mxu1  ;;  %914 = vperm.xlu1 %2618, %v859_v26  }
 0x1cf   : > { %v599_v39 = vadd.f32 %v2416_v37, %v2123_v22  ;;  %2433 = vmatprep.mubr.msk.bf16.mxu1 %vm512_vm0, %v650_v35  ;;  %v638_v45 = vmax.f32 %v588_v38, 0.0 }
 0x1d0   : > { %v590_v41 = vpop.f32.mrf.mxu1  ;;  %2434 = vmatmul.mubr.msk.bf16.vlgmr.msra.gmra.mxu1 %vm512_vm0, %v651_v36  ;;  %v2144_v36 = vld [vmem:[%s3207_s3 + $0x2] ss:$0 sm:$0xff] }
 0x1d1   : > { %v591_v42 = vadd.f32 %v2123_v22, %v590_v41  ;;  %v641_v43 = vmax.f32 %v599_v39, 0.0  ;;  %2474 = vmatpush3.bf16.msra.mxu1 %v2647_v19 }
 0x1d2   : > { %v2419_v44 = vpop.f32.mrf.mxu1  ;;  %2475 = vmatprep.subr.bf16.mxu1 %v2648_v24  ;;  %924 = vperm.xlu1 %2618, %v861_v28   ;;  %v2651_v28 = vld [vmem:[%s3206_s2 + $0x158] sm:$0xff]  }
 0x1d3   : > { %v639_v46 = vmax.f32 %v591_v42, 0.0  ;;  %v612_v48 = vadd.f32 %v2419_v44, %v2123_v22  ;;  %v653_v52 = vpack.c.bf16 %v641_v43, %v640_v47  ;;  %2497 = vmatprep.subr.bf16.mxu0 %v2651_v28 }
 0x1d4   : > { %v603_v49 = vpop.f32.mrf.mxu1 }
 0x1d5   : > { %v652_v50 = vpack.c.bf16 %v639_v46, %v638_v45  ;;  %v604_v51 = vadd.f32 %v2123_v22, %v603_v49  ;;  %v644_v55 = vmax.f32 %v612_v48, 0.0  ;;  %2476 = vmatpush3.bf16.msra.mxu1 %v2648_v24 }
 0x1d6   : > { %v2420_v53 = vpop.f32.mrf.mxu1  ;;  %2477 = vmatprep.subr.bf16.mxu1 %v2649_v29  ;;  %934 = vperm.xlu1 %2618, %v863_v31   ;;  %v870_v31 = vpop.permute.xlu0 %869 }
 0x1d7   : > { %v615_v54 = vadd.f32 %v2420_v53, %v2123_v22  ;;  %2437 = vmatprep.mubr.msk.bf16.mxu1 %vm512_vm0, %v652_v50  ;;  %v642_v57 = vmax.f32 %v604_v51, 0.0 }
 0x1d8   : > { %v606_v56 = vpop.f32.mrf.mxu1  ;;  %2438 = vmatmul.mubr.msk.bf16.gmra.mxu1 %vm512_vm0, %v653_v52 }
 0x1d9   : > { %v645_v58 = vmax.f32 %v615_v54, 0.0  ;;  %v607_v59 = vadd.f32 %v2123_v22, %v606_v56  ;;  %2478 = vmatpush3.bf16.msra.mxu1 %v2649_v29  ;;  %v2652_v29 = vld [vmem:[%s3206_s2 + $0x150] sm:$0xff]  }
 0x1da   : > { %v2423_v60 = vpop.f32.mrf.mxu1  ;;  %944 = vperm.xlu1 %2618, %v865_v33   ;;  %v875_v33 = vpop.permute.xlu0 %874 }
 0x1db   : > { %v643_v61 = vmax.f32 %v607_v59, 0.0  ;;  %v655_v62 = vpack.c.bf16 %v645_v58, %v644_v55  ;;  %v628_v63 = vadd.f32 %v2423_v60, %v2123_v22 }
 0x1dc   : > { %v619_v0 = vpop.f32.mrf.mxu1 }
 0x1dd   : > { %v654_v1 = vpack.c.bf16 %v643_v61, %v642_v57  ;;  %v620_v2 = vadd.f32 %v2123_v22, %v619_v0  ;;  %v648_v5 = vmax.f32 %v628_v63, 0.0 }
 0x1de   : > { %v2424_v3 = vpop.f32.mrf.mxu1 }
 0x1df   : > { %v631_v4 = vadd.f32 %v2424_v3, %v2123_v22  ;;  %2441 = vmatprep.mubr.msk.bf16.mxu1 %vm512_vm0, %v654_v1  ;;  %v646_v7 = vmax.f32 %v620_v2, 0.0 }
 0x1e0   : > { %v622_v6 = vpop.f32.mrf.mxu1  ;;  %2442 = vmatmul.mubr.msk.bf16.gmra.mxu1 %vm512_vm0, %v655_v62 }
 0x1e1   : > { %v649_v8 = vmax.f32 %v631_v4, 0.0  ;;  %v623_v9 = vadd.f32 %v2123_v22, %v622_v6  ;;  %v856_v22 = vld [vmem:[%s2925_s5 + $0x30] sm:$0xff]  ;;  %s205_s5 = sand.u32 1, %s2719_s16  }
 0x1e2   : > { %899 = vperm.xlu0 %2617, %v856_v22   ;;  %s206_s6 = scalar_lea.vmem [#allocation2], %s205_s5  ;;  %s2011_s11 = scalar_lea.sflag [#allocation3], %s205_s5 }
 0x1e3   : > { %v647_v10 = vmax.f32 %v623_v9, 0.0  ;;  %v657_v11 = vpack.c.bf16 %v649_v8, %v648_v5  ;;  %s2023_s7 = sshll.u32 %s206_s6, 4  ;;  %s2024_s7 = int_to_ptr.vmem [resolvable:$true] %s2023_s7 }
 0x1e4   : > { %s2667_s13 = scalar_lea.vmem %s2024_s7, 16  ;;  %p2674_p0 = scmp.lt.s32.totalorder %s2024_s7, %s2672_s19 }
 0x1e5   : > { %v656_v12 = vpack.c.bf16 %v647_v10, %v646_v7  ;;  %p2668_p11 = scmp.ne.s32.totalorder %s2024_s7, %s2667_s13  ;;  %p2675_p1 = scmp.lt.s32.totalorder %s2673_s12, %s2667_s13 }
 0x1e6   : > { %909 = vperm.xlu0 %2617, %v858_v25  }
 0x1e7   : > { %2445 = vmatprep.mubr.msk.bf16.mxu1 %vm512_vm0, %v656_v12  ;;  %p2669_p12 = pnand %p2668_p11, %p2791_p5  ;;  %p2676_p2 = por %p2675_p1, %p2674_p0 }
 0x1e8   : > { %2446 = vmatmul.mubr.msk.bf16.gmra.mxu1 %vm512_vm0, %v657_v11 }
 0x1e9   : > { %p2670_p13 = pneg %p2669_p12 }
 0x1ea   : > { %919 = vperm.xlu0 %2617, %v860_v27   ;;  %v2650_v27 = vld [vmem:[%s3206_s2 + $0x100] sm:$0xff]  }
 0x1eb   : > { %2479 = vmatprep.subr.bf16.mxu1 %v2650_v27  ;;  %p2677_p3 = pnand %p2676_p2, %p2670_p13 }
 0x1ec   : > { %2480 = vmatpush3.bf16.msra.mxu1 %v2650_v27 }
 0x1ee   : > { %929 = vperm.xlu0 %2617, %v862_v30   ;;  %v2653_v30 = vld [vmem:[%s3206_s2 + $0x148] sm:$0xff]  }
 0x1f2   : > { %939 = vperm.xlu0 %2617, %v864_v32   ;;  %v880_v32 = vpop.permute.xlu1 %879 }
 0x290   : > { %v2435_v34 = vpop.f32.mrf.mxu1 }
 0x291   : > { %v763_v40 = vadd.f32 %v2435_v34, %v2144_v36  ;;  %v885_v34 = vpop.permute.xlu1 %884 }
 0x292   : > { %v754_v35 = vpop.f32.mrf.mxu1 }
 0x293   : > { %v755_v38 = vadd.f32 %v2144_v36, %v754_v35  ;;  %v819_v47 = vmax.f32 %v763_v40, 0.0  ;;  %v890_v35 = vpop.permute.xlu0 %889 }
 0x294   : > { %v2436_v37 = vpop.f32.mrf.mxu1 }
 0x295   : > { %v766_v39 = vadd.f32 %v2436_v37, %v2144_v36  ;;  %v817_v45 = vmax.f32 %v755_v38, 0.0  ;;  %v2978_v37 = vld [vmem:[%s3207_s3 + $0x8] ss:$0 sm:$0xff] }
 0x296   : > { %v757_v41 = vpop.f32.mrf.mxu1  ;;  %v951_v38 = vmul.f32 %v2978_v37, %v870_v31  ;;  %v953_v40 = vmul.f32 %v2978_v37, %v880_v32 }
 0x297   : > { %v758_v42 = vadd.f32 %v2144_v36, %v757_v41  ;;  %v820_v43 = vmax.f32 %v766_v39, 0.0  ;;  %v900_v39 = vpop.permute.xlu0 %899 }
 0x298   : > { %v2439_v44 = vpop.f32.mrf.mxu1 }
 0x299   : > { %v818_v46 = vmax.f32 %v758_v42, 0.0  ;;  %v834_v50 = vpack.c.bf16 %v820_v43, %v819_v47  ;;  %v779_v54 = vadd.f32 %v2439_v44, %v2144_v36  ;;  %v954_v43 = vmul.f32 %v2978_v37, %v885_v34 }
 0x29a   : > { %v770_v48 = vpop.f32.mrf.mxu1 }
 0x29b   : > { %v833_v49 = vpack.c.bf16 %v818_v46, %v817_v45  ;;  %v771_v52 = vadd.f32 %v2144_v36, %v770_v48  ;;  %v823_v61 = vmax.f32 %v779_v54, 0.0  ;;  %v952_v48 = vmul.f32 %v2978_v37, %v875_v33 }
 0x29c   : > { %v2440_v51 = vpop.f32.mrf.mxu1 }
 0x29d   : > { %v782_v53 = vadd.f32 %v2440_v51, %v2144_v36  ;;  %2457 = vmatprep.mubr.msk.bf16.mxu0 %vm512_vm0, %v833_v49  ;;  %v821_v59 = vmax.f32 %v771_v52, 0.0  ;;  %v910_v49 = vpop.permute.xlu0 %909 }
 0x29e   : > { %v773_v55 = vpop.f32.mrf.mxu1  ;;  %2458 = vmatmul.mubr.msk.bf16.vlgmr.msra.gmra.mxu0 %vm512_vm0, %v834_v50  ;;  %v2987_v50 = vld [vmem:[%s3207_s3 + $0x3] ss:$0 sm:$0xff] }
 0x29f   : > { %v774_v56 = vadd.f32 %v2144_v36, %v773_v55  ;;  %v824_v57 = vmax.f32 %v782_v53, 0.0  ;;  %2498 = vmatpush3.bf16.msra.mxu0 %v2651_v28 }
 0x2a0   : > { %v2443_v58 = vpop.f32.mrf.mxu1  ;;  %2499 = vmatprep.subr.bf16.mxu0 %v2652_v29 }
 0x2a1   : > { %v822_v60 = vmax.f32 %v774_v56, 0.0  ;;  %v836_v0 = vpack.c.bf16 %v824_v57, %v823_v61  ;;  %v795_v4 = vadd.f32 %v2443_v58, %v2144_v36  ;;  %v957_v61 = vmul.f32 %v2978_v37, %v900_v39 }
 0x2a2   : > { %v786_v62 = vpop.f32.mrf.mxu1 }
 0x2a3   : > { %v835_v63 = vpack.c.bf16 %v822_v60, %v821_v59  ;;  %v787_v2 = vadd.f32 %v2144_v36, %v786_v62  ;;  %v827_v11 = vmax.f32 %v795_v4, 0.0  ;;  %2500 = vmatpush3.bf16.msra.mxu0 %v2652_v29  ;;  %v955_v59 = vmul.f32 %v2978_v37, %v890_v35 }
 0x2a4   : > { %v2444_v1 = vpop.f32.mrf.mxu1  ;;  %2501 = vmatprep.subr.bf16.mxu0 %v2653_v30 }
 0x2a5   : > { %v798_v3 = vadd.f32 %v2444_v1, %v2144_v36  ;;  %2461 = vmatprep.mubr.msk.bf16.mxu0 %vm512_vm0, %v835_v63  ;;  %v825_v9 = vmax.f32 %v787_v2, 0.0  ;;  %v920_v1 = vpop.permute.xlu0 %919 }
 0x2a6   : > { %v789_v5 = vpop.f32.mrf.mxu1  ;;  %2462 = vmatmul.mubr.msk.bf16.gmra.mxu0 %vm512_vm0, %v836_v0 }
 0x2a7   : > { %v790_v6 = vadd.f32 %v2144_v36, %v789_v5  ;;  %v828_v7 = vmax.f32 %v798_v3, 0.0  ;;  %2502 = vmatpush3.bf16.msra.mxu0 %v2653_v30 }
 0x2a8   : > { %v2447_v8 = vpop.f32.mrf.mxu1 }
 0x2a9   : > { %v826_v10 = vmax.f32 %v790_v6, 0.0  ;;  %v811_v12 = vadd.f32 %v2447_v8, %v2144_v36  ;;  %v838_v16 = vpack.c.bf16 %v828_v7, %v827_v11 }
 0x2aa   : > { %v802_v13 = vpop.f32.mrf.mxu1 }
 0x2ab   : > { %v837_v14 = vpack.c.bf16 %v826_v10, %v825_v9  ;;  %v803_v15 = vadd.f32 %v2144_v36, %v802_v13  ;;  %v831_v19 = vmax.f32 %v811_v12, 0.0 }
 0x2ac   : > { %v2448_v17 = vpop.f32.mrf.mxu1 }
 0x2ad   : > { %v814_v18 = vadd.f32 %v2448_v17, %v2144_v36  ;;  %2465 = vmatprep.mubr.msk.bf16.mxu0 %vm512_vm0, %v837_v14  ;;  %v829_v21 = vmax.f32 %v803_v15, 0.0 }
 0x2ae   : > { %v805_v20 = vpop.f32.mrf.mxu1  ;;  %2466 = vmatmul.mubr.msk.bf16.gmra.mxu0 %vm512_vm0, %v838_v16 }
 0x2af   : > { %v832_v22 = vmax.f32 %v814_v18, 0.0  ;;  %v806_v23 = vadd.f32 %v2144_v36, %v805_v20  ;;  %v895_v36 = vpop.permute.xlu1 %894  ;;  %v930_v20 = vpop.permute.xlu0 %929 }
 0x2b0   : > { %v956_v9 = vmul.f32 %v2978_v37, %v895_v36 }
 0x2b1   : > { %v830_v24 = vmax.f32 %v806_v23, 0.0  ;;  %v840_v25 = vpack.c.bf16 %v832_v22, %v831_v19  ;;  %v959_v19 = vmul.f32 %v2978_v37, %v910_v49  ;;  %v961_v22 = vmul.f32 %v2978_v37, %v920_v1 }
 0x2b3   : > { %v839_v26 = vpack.c.bf16 %v830_v24, %v829_v21  ;;  %v905_v41 = vpop.permute.xlu1 %904  ;;  %v940_v39 = vpop.permute.xlu0 %939 }
 0x2b4   : > { %v958_v0 = vmul.f32 %v2978_v37, %v905_v41 }
 0x2b5   : > { %2469 = vmatprep.mubr.msk.bf16.mxu0 %vm512_vm0, %v839_v26 }
 0x2b6   : > { %2470 = vmatmul.mubr.msk.bf16.gmra.mxu0 %vm512_vm0, %v840_v25 }
 0x2b7   : > { %v915_v52 = vpop.permute.xlu1 %914 }
 0x2b8   : > { %v960_v33 = vmul.f32 %v2978_v37, %v915_v52 }
 0x2bb   : > { %v925_v5 = vpop.permute.xlu1 %924 }
 0x2bc   : > { %v962_v26 = vmul.f32 %v2978_v37, %v925_v5 }
 0x2bf   : > { %v935_v23 = vpop.permute.xlu1 %934 }
 0x35e   : > { %v2459_v42 = vpop.f32.mrf.mxu0 }
 0x35f   : > { %v1058_v46 = vadd.f32 %v2459_v42, %v953_v40 }
 0x360   : > { %v1049_v44 = vpop.f32.mrf.mxu0 }
 0x361   : > { %v1050_v45 = vadd.f32 %v1049_v44, %v951_v38  ;;  %v1119_v57 = vadd.f32 %v2987_v50, %v1058_v46  ;;  %v963_v46 = vmul.f32 %v2978_v37, %v930_v20 }
 0x362   : > { %v2460_v47 = vpop.f32.mrf.mxu0 }
 0x363   : > { %v1061_v51 = vadd.f32 %v2460_v47, %v954_v43  ;;  %v1117_v54 = vadd.f32 %v2987_v50, %v1050_v45  ;;  %v1135_v6 = vmax.f32 %v1119_v57, 0.0  ;;  %v945_v43 = vpop.permute.xlu1 %944 }
 0x364   : > { %v1052_v53 = vpop.f32.mrf.mxu0  ;;  %v966_v52 = vmul.f32 %v2978_v37, %v945_v43 }
 0x365   : > { %v1120_v55 = vadd.f32 %v2987_v50, %v1061_v51  ;;  %v1053_v56 = vadd.f32 %v1052_v53, %v952_v48  ;;  %v1133_v2 = vmax.f32 %v1117_v54, 0.0  ;;  %v965_v48 = vmul.f32 %v2978_v37, %v940_v39 }
 0x366   : > { %v2463_v58 = vpop.f32.mrf.mxu0 }
 0x367   : > { %v1118_v60 = vadd.f32 %v2987_v50, %v1053_v56  ;;  %v1136_v62 = vmax.f32 %v1120_v55, 0.0  ;;  %v1074_v7 = vadd.f32 %v2463_v58, %v957_v61 }
 0x368   : > { %v1065_v63 = vpop.f32.mrf.mxu0 }
 0x369   : > { %v1134_v3 = vmax.f32 %v1118_v60, 0.0  ;;  %v1066_v4 = vadd.f32 %v1065_v63, %v955_v59  ;;  %v1150_v12 = vpack.c.bf16 %v1136_v62, %v1135_v6  ;;  %v1123_v17 = vadd.f32 %v2987_v50, %v1074_v7 }
 0x36a   : > { %v2464_v8 = vpop.f32.mrf.mxu0  ;;  %v964_v59 = vmul.f32 %v2978_v37, %v935_v23 }
 0x36b   : > { %v1149_v10 = vpack.c.bf16 %v1134_v3, %v1133_v2  ;;  %v1077_v11 = vadd.f32 %v2464_v8, %v958_v0  ;;  %v1121_v14 = vadd.f32 %v2987_v50, %v1066_v4  ;;  %v1139_v30 = vmax.f32 %v1123_v17, 0.0 }
 0x36c   : > { %v1068_v13 = vpop.f32.mrf.mxu0 }
 0x36d   : > { %v1124_v15 = vadd.f32 %v2987_v50, %v1077_v11  ;;  %v1069_v16 = vadd.f32 %v1068_v13, %v956_v9  ;;  %2481 = vmatprep.mubr.msk.bf16.mxu1 %vm512_vm0, %v1149_v10  ;;  %v1137_v27 = vmax.f32 %v1121_v14, 0.0  ;;  %v2654_v10 = vld [vmem:[%s3206_s2 + $0x140] sm:$0xff]   ;;  %v2656_v11 = vld [vmem:[%s3206_s2 + $0x190] sm:$0xff]  }
 0x36e   : > { %v2467_v18 = vpop.f32.mrf.mxu0  ;;  %2482 = vmatmul.mubr.msk.bf16.vlgmr.msra.gmra.mxu1 %vm512_vm0, %v1150_v12  ;;  %2503 = vmatprep.subr.bf16.mxu0 %v2654_v10  ;;  %v2657_v12 = vld [vmem:[%s3206_s2 + $0x188] sm:$0xff]  }
 0x36f   : > { %v1122_v21 = vadd.f32 %v2987_v50, %v1069_v16  ;;  %v1140_v24 = vmax.f32 %v1124_v15, 0.0  ;;  %v1090_v31 = vadd.f32 %v2467_v18, %v961_v22  ;;  %2504 = vmatpush3.bf16.msra.mxu0 %v2654_v10  ;;  %v2187_v15 = vld [vmem:[%s3207_s3 + $0x4] ss:$0 sm:$0xff]  ;;  %v2661_v10 = vld [vmem:[%s3206_s2 + $0x1c8] sm:$0xff]  }
 0x370   : > { %v1081_v25 = vpop.f32.mrf.mxu0 }
 0x371   : > { %v1138_v28 = vmax.f32 %v1122_v21, 0.0  ;;  %v1082_v29 = vadd.f32 %v1081_v25, %v959_v19  ;;  %v1152_v36 = vpack.c.bf16 %v1140_v24, %v1139_v30  ;;  %v1127_v44 = vadd.f32 %v2987_v50, %v1090_v31 }
 0x372   : > { %v2468_v32 = vpop.f32.mrf.mxu0 }
 0x373   : > { %v1151_v34 = vpack.c.bf16 %v1138_v28, %v1137_v27  ;;  %v1093_v35 = vadd.f32 %v2468_v32, %v962_v26  ;;  %v1125_v40 = vadd.f32 %v2987_v50, %v1082_v29  ;;  %v1143_v56 = vmax.f32 %v1127_v44, 0.0 }
 0x374   : > { %v1084_v38 = vpop.f32.mrf.mxu0 }
 0x375   : > { %v1128_v41 = vadd.f32 %v2987_v50, %v1093_v35  ;;  %v1085_v42 = vadd.f32 %v1084_v38, %v960_v33  ;;  %2485 = vmatprep.mubr.msk.bf16.mxu1 %vm512_vm0, %v1151_v34  ;;  %v1141_v53 = vmax.f32 %v1125_v40, 0.0 }
 0x376   : > { %v2471_v45 = vpop.f32.mrf.mxu0  ;;  %2486 = vmatmul.mubr.msk.bf16.gmra.mxu1 %vm512_vm0, %v1152_v36 }
 0x377   : > { %v1126_v47 = vadd.f32 %v2987_v50, %v1085_v42  ;;  %v1144_v49 = vmax.f32 %v1128_v41, 0.0  ;;  %v1106_v57 = vadd.f32 %v2471_v45, %v965_v48 }
 0x378   : > { %v1097_v51 = vpop.f32.mrf.mxu0 }
 0x379   : > { %v1142_v54 = vmax.f32 %v1126_v47, 0.0  ;;  %v1098_v55 = vadd.f32 %v1097_v51, %v963_v46  ;;  %v1154_v62 = vpack.c.bf16 %v1144_v49, %v1143_v56  ;;  %v1131_v3 = vadd.f32 %v2987_v50, %v1106_v57 }
 0x37a   : > { %v2472_v58 = vpop.f32.mrf.mxu0 }
 0x37b   : > { %v1153_v60 = vpack.c.bf16 %v1142_v54, %v1141_v53  ;;  %v1109_v61 = vadd.f32 %v2472_v58, %v966_v52  ;;  %v1129_v0 = vadd.f32 %v2987_v50, %v1098_v55  ;;  %v1147_v7 = vmax.f32 %v1131_v3, 0.0 }
 0x37c   : > { %v1100_v63 = vpop.f32.mrf.mxu0 }
 0x37d   : > { %v1132_v1 = vadd.f32 %v2987_v50, %v1109_v61  ;;  %v1101_v2 = vadd.f32 %v1100_v63, %v964_v59  ;;  %2489 = vmatprep.mubr.msk.bf16.mxu1 %vm512_vm0, %v1153_v60  ;;  %v1145_v6 = vmax.f32 %v1129_v0, 0.0 }
 0x37e   : > { %2490 = vmatmul.mubr.msk.bf16.gmra.mxu1 %vm512_vm0, %v1154_v62 }
 0x37f   : > { %v1130_v4 = vadd.f32 %v2987_v50, %v1101_v2  ;;  %v1148_v5 = vmax.f32 %v1132_v1, 0.0  ;;  %v2655_v50 = vld [vmem:[%s3206_s2 + $0x198] sm:$0xff]  }
 0x380   : > { %2521 = vmatprep.subr.bf16.mxu1 %v2655_v50 }
 0x381   : > { %v1146_v37 = vmax.f32 %v1130_v4, 0.0  ;;  %v1156_v9 = vpack.c.bf16 %v1148_v5, %v1147_v7  ;;  %2522 = vmatpush3.bf16.msra.mxu1 %v2655_v50  ;;  %v2658_v7 = vld [vmem:[%s3206_s2 + $0x180] sm:$0xff]  }
 0x382   : > { %2523 = vmatprep.subr.bf16.mxu1 %v2656_v11 }
 0x383   : > { %v1155_v8 = vpack.c.bf16 %v1146_v37, %v1145_v6 }
 0x385   : > { %2493 = vmatprep.mubr.msk.bf16.mxu1 %vm512_vm0, %v1155_v8  ;;  %2524 = vmatpush3.bf16.msra.mxu1 %v2656_v11  ;;  %v2659_v8 = vld [vmem:[%s3206_s2 + $0x1d8] sm:$0xff]  }
 0x386   : > { %2494 = vmatmul.mubr.msk.bf16.gmra.mxu1 %vm512_vm0, %v1156_v9  ;;  %2525 = vmatprep.subr.bf16.mxu1 %v2657_v12  ;;  %v2660_v9 = vld [vmem:[%s3206_s2 + $0x1d0] sm:$0xff]  }
 0x387   : > { %2545 = vmatprep.subr.bf16.mxu0 %v2659_v8 }
 0x389   : > { %2526 = vmatpush3.bf16.msra.mxu1 %v2657_v12  ;;  %v2208_v12 = vld [vmem:[%s3207_s3 + $0x5] ss:$0 sm:$0xff] }
 0x38a   : > { %2527 = vmatprep.subr.bf16.mxu1 %v2658_v7 }
 0x38d   : > { %2528 = vmatpush3.bf16.msra.mxu1 %v2658_v7  ;;  %v2229_v7 = vld [vmem:[%s3207_s3 + $0x6] ss:$0 sm:$0xff] }
 0x38e   : > { %2569 = vmatprep.subr.bf16.mxu1 %v2659_v8 }
 0x42e   : > { %v2483_v13 = vpop.f32.mrf.mxu1 }
 0x42f   : > { %v1262_v19 = vadd.f32 %v2483_v13, %v2187_v15 }
 0x430   : > { %v1253_v14 = vpop.f32.mrf.mxu1 }
 0x431   : > { %v1254_v17 = vadd.f32 %v2187_v15, %v1253_v14  ;;  %v1318_v26 = vmax.f32 %v1262_v19, 0.0 }
 0x432   : > { %v2484_v16 = vpop.f32.mrf.mxu1 }
 0x433   : > { %v1265_v18 = vadd.f32 %v2484_v16, %v2187_v15  ;;  %v1316_v24 = vmax.f32 %v1254_v17, 0.0 }
 0x434   : > { %v1256_v20 = vpop.f32.mrf.mxu1 }
 0x435   : > { %v1257_v21 = vadd.f32 %v2187_v15, %v1256_v20  ;;  %v1319_v22 = vmax.f32 %v1265_v18, 0.0 }
 0x436   : > { %v2487_v23 = vpop.f32.mrf.mxu1 }
 0x437   : > { %v1317_v25 = vmax.f32 %v1257_v21, 0.0  ;;  %v1333_v29 = vpack.c.bf16 %v1319_v22, %v1318_v26  ;;  %v1278_v33 = vadd.f32 %v2487_v23, %v2187_v15 }
 0x438   : > { %v1269_v27 = vpop.f32.mrf.mxu1 }
 0x439   : > { %v1332_v28 = vpack.c.bf16 %v1317_v25, %v1316_v24  ;;  %v1270_v31 = vadd.f32 %v2187_v15, %v1269_v27  ;;  %v1322_v41 = vmax.f32 %v1278_v33, 0.0 }
 0x43a   : > { %v2488_v30 = vpop.f32.mrf.mxu1 }
 0x43b   : > { %v1281_v32 = vadd.f32 %v2488_v30, %v2187_v15  ;;  %2505 = vmatprep.mubr.msk.bf16.mxu0 %vm512_vm0, %v1332_v28  ;;  %v1320_v39 = vmax.f32 %v1270_v31, 0.0 }
 0x43c   : > { %v1272_v34 = vpop.f32.mrf.mxu1  ;;  %2506 = vmatmul.mubr.msk.bf16.vlgmr.msra.gmra.mxu0 %vm512_vm0, %v1333_v29 }
 0x43d   : > { %v1273_v35 = vadd.f32 %v2187_v15, %v1272_v34  ;;  %v1323_v36 = vmax.f32 %v1281_v32, 0.0  ;;  %2546 = vmatpush3.bf16.msra.mxu0 %v2659_v8 }
 0x43e   : > { %v2491_v38 = vpop.f32.mrf.mxu1  ;;  %2547 = vmatprep.subr.bf16.mxu0 %v2660_v9 }
 0x43f   : > { %v1321_v40 = vmax.f32 %v1273_v35, 0.0  ;;  %v1335_v44 = vpack.c.bf16 %v1323_v36, %v1322_v41  ;;  %v1294_v48 = vadd.f32 %v2491_v38, %v2187_v15 }
 0x440   : > { %v1285_v42 = vpop.f32.mrf.mxu1 }
 0x441   : > { %v1334_v43 = vpack.c.bf16 %v1321_v40, %v1320_v39  ;;  %v1286_v46 = vadd.f32 %v2187_v15, %v1285_v42  ;;  %v1326_v56 = vmax.f32 %v1294_v48, 0.0  ;;  %2548 = vmatpush3.bf16.msra.mxu0 %v2660_v9 }
 0x442   : > { %v2492_v45 = vpop.f32.mrf.mxu1  ;;  %2549 = vmatprep.subr.bf16.mxu0 %v2661_v10 }
 0x443   : > { %v1297_v47 = vadd.f32 %v2492_v45, %v2187_v15  ;;  %2509 = vmatprep.mubr.msk.bf16.mxu0 %vm512_vm0, %v1334_v43  ;;  %v1324_v54 = vmax.f32 %v1286_v46, 0.0 }
 0x444   : > { %v1288_v49 = vpop.f32.mrf.mxu1  ;;  %2510 = vmatmul.mubr.msk.bf16.gmra.mxu0 %vm512_vm0, %v1335_v44 }
 0x445   : > { %v1289_v51 = vadd.f32 %v2187_v15, %v1288_v49  ;;  %v1327_v52 = vmax.f32 %v1297_v47, 0.0  ;;  %2550 = vmatpush3.bf16.msra.mxu0 %v2661_v10 }
 0x446   : > { %v2495_v53 = vpop.f32.mrf.mxu1 }
 0x447   : > { %v1325_v55 = vmax.f32 %v1289_v51, 0.0  ;;  %v1337_v59 = vpack.c.bf16 %v1327_v52, %v1326_v56  ;;  %v1310_v63 = vadd.f32 %v2495_v53, %v2187_v15 }
 0x448   : > { %v1301_v57 = vpop.f32.mrf.mxu1 }
 0x449   : > { %v1336_v58 = vpack.c.bf16 %v1325_v55, %v1324_v54  ;;  %v1302_v61 = vadd.f32 %v2187_v15, %v1301_v57  ;;  %v1330_v5 = vmax.f32 %v1310_v63, 0.0 }
 0x44a   : > { %v2496_v60 = vpop.f32.mrf.mxu1 }
 0x44b   : > { %v1313_v62 = vadd.f32 %v2496_v60, %v2187_v15  ;;  %2513 = vmatprep.mubr.msk.bf16.mxu0 %vm512_vm0, %v1336_v58  ;;  %v1328_v3 = vmax.f32 %v1302_v61, 0.0 }
 0x44c   : > { %v1304_v0 = vpop.f32.mrf.mxu1  ;;  %2514 = vmatmul.mubr.msk.bf16.gmra.mxu0 %vm512_vm0, %v1337_v59 }
 0x44d   : > { %v1305_v1 = vadd.f32 %v2187_v15, %v1304_v0  ;;  %v1331_v2 = vmax.f32 %v1313_v62, 0.0 }
 0x44f   : > { %v1329_v4 = vmax.f32 %v1305_v1, 0.0  ;;  %v1339_v37 = vpack.c.bf16 %v1331_v2, %v1330_v5  ;;  %v2662_v5 = vld [vmem:[%s3206_s2 + $0x1c0] sm:$0xff]  }
 0x450   : > { %2551 = vmatprep.subr.bf16.mxu0 %v2662_v5 }
 0x451   : > { %v1338_v6 = vpack.c.bf16 %v1329_v4, %v1328_v3  ;;  %2552 = vmatpush3.bf16.msra.mxu0 %v2662_v5 }
 0x453   : > { %2517 = vmatprep.mubr.msk.bf16.mxu0 %vm512_vm0, %v1338_v6 }
 0x454   : > { %2518 = vmatmul.mubr.msk.bf16.gmra.mxu0 %vm512_vm0, %v1339_v37 }
 0x4fc   : > { %v2507_v50 = vpop.f32.mrf.mxu0 }
 0x4fd   : > { %v1445_v16 = vadd.f32 %v2507_v50, %v2208_v12 }
 0x4fe   : > { %v1436_v11 = vpop.f32.mrf.mxu0 }
 0x4ff   : > { %v1437_v14 = vadd.f32 %v2208_v12, %v1436_v11  ;;  %v1501_v23 = vmax.f32 %v1445_v16, 0.0 }
 0x500   : > { %v2508_v13 = vpop.f32.mrf.mxu0 }
 0x501   : > { %v1448_v15 = vadd.f32 %v2508_v13, %v2208_v12  ;;  %v1499_v21 = vmax.f32 %v1437_v14, 0.0 }
 0x502   : > { %v1439_v17 = vpop.f32.mrf.mxu0 }
 0x503   : > { %v1440_v18 = vadd.f32 %v2208_v12, %v1439_v17  ;;  %v1502_v19 = vmax.f32 %v1448_v15, 0.0 }
 0x504   : > { %v2511_v20 = vpop.f32.mrf.mxu0 }
 0x505   : > { %v1500_v22 = vmax.f32 %v1440_v18, 0.0  ;;  %v1516_v26 = vpack.c.bf16 %v1502_v19, %v1501_v23  ;;  %v1461_v30 = vadd.f32 %v2511_v20, %v2208_v12 }
 0x506   : > { %v1452_v24 = vpop.f32.mrf.mxu0 }
 0x507   : > { %v1515_v25 = vpack.c.bf16 %v1500_v22, %v1499_v21  ;;  %v1453_v28 = vadd.f32 %v2208_v12, %v1452_v24  ;;  %v1505_v38 = vmax.f32 %v1461_v30, 0.0 }
 0x508   : > { %v2512_v27 = vpop.f32.mrf.mxu0 }
 0x509   : > { %v1464_v29 = vadd.f32 %v2512_v27, %v2208_v12  ;;  %2529 = vmatprep.mubr.msk.bf16.mxu1 %vm512_vm0, %v1515_v25  ;;  %v1503_v35 = vmax.f32 %v1453_v28, 0.0 }
 0x50a   : > { %v1455_v31 = vpop.f32.mrf.mxu0  ;;  %2530 = vmatmul.mubr.msk.bf16.vlgmr.msra.gmra.mxu1 %vm512_vm0, %v1516_v26 }
 0x50b   : > { %v1456_v32 = vadd.f32 %v2208_v12, %v1455_v31  ;;  %2573 = vmatpush3.bf16.msra.mxu1 %v2659_v8  ;;  %v1506_v33 = vmax.f32 %v1464_v29, 0.0 }
 0x50c   : > { %v2515_v34 = vpop.f32.mrf.mxu0  ;;  %2570 = vmatprep.subr.bf16.mxu1 %v2660_v9 }
 0x50d   : > { %v1504_v36 = vmax.f32 %v1456_v32, 0.0  ;;  %v1518_v41 = vpack.c.bf16 %v1506_v33, %v1505_v38  ;;  %v1477_v45 = vadd.f32 %v2515_v34, %v2208_v12 }
 0x50e   : > { %v1468_v39 = vpop.f32.mrf.mxu0 }
 0x50f   : > { %v1517_v40 = vpack.c.bf16 %v1504_v36, %v1503_v35  ;;  %2574 = vmatpush3.bf16.msra.mxu1 %v2660_v9  ;;  %v1469_v43 = vadd.f32 %v2208_v12, %v1468_v39  ;;  %v1509_v53 = vmax.f32 %v1477_v45, 0.0 }
 0x510   : > { %v2516_v42 = vpop.f32.mrf.mxu0  ;;  %2571 = vmatprep.subr.bf16.mxu1 %v2661_v10 }
 0x511   : > { %v1480_v44 = vadd.f32 %v2516_v42, %v2208_v12  ;;  %2533 = vmatprep.mubr.msk.bf16.mxu1 %vm512_vm0, %v1517_v40  ;;  %v1507_v51 = vmax.f32 %v1469_v43, 0.0 }
 0x512   : > { %v1471_v46 = vpop.f32.mrf.mxu0  ;;  %2534 = vmatmul.mubr.msk.bf16.gmra.mxu1 %vm512_vm0, %v1518_v41 }
 0x513   : > { %v1472_v47 = vadd.f32 %v2208_v12, %v1471_v46  ;;  %2575 = vmatpush3.bf16.msra.mxu1 %v2661_v10  ;;  %v1510_v48 = vmax.f32 %v1480_v44, 0.0 }
 0x514   : > { %v2519_v49 = vpop.f32.mrf.mxu0  ;;  %2572 = vmatprep.subr.bf16.mxu1 %v2662_v5 }
 0x515   : > { %v1508_v52 = vmax.f32 %v1472_v47, 0.0  ;;  %v1520_v56 = vpack.c.bf16 %v1510_v48, %v1509_v53  ;;  %v1493_v60 = vadd.f32 %v2519_v49, %v2208_v12 }
 0x516   : > { %v1484_v54 = vpop.f32.mrf.mxu0 }
 0x517   : > { %v1519_v55 = vpack.c.bf16 %v1508_v52, %v1507_v51  ;;  %v1485_v58 = vadd.f32 %v2208_v12, %v1484_v54  ;;  %v1513_v2 = vmax.f32 %v1493_v60, 0.0  ;;  %2576 = vmatpush3.bf16.msra.mxu1 %v2662_v5 }
 0x518   : > { %v2520_v57 = vpop.f32.mrf.mxu0 }
 0x519   : > { %v1496_v59 = vadd.f32 %v2520_v57, %v2208_v12  ;;  %2537 = vmatprep.mubr.msk.bf16.mxu1 %vm512_vm0, %v1519_v55  ;;  %v1511_v0 = vmax.f32 %v1485_v58, 0.0 }
 0x51a   : > { %v1487_v61 = vpop.f32.mrf.mxu0  ;;  %2538 = vmatmul.mubr.msk.bf16.gmra.mxu1 %vm512_vm0, %v1520_v56 }
 0x51b   : > { %v1488_v62 = vadd.f32 %v2208_v12, %v1487_v61  ;;  %v1514_v63 = vmax.f32 %v1496_v59, 0.0 }
 0x51d   : > { %v1512_v1 = vmax.f32 %v1488_v62, 0.0  ;;  %v1522_v4 = vpack.c.bf16 %v1514_v63, %v1513_v2  ;;  %v3088_v63 = vld [vmem:[%s3207_s3 + $0x7] ss:$0 sm:$0xff] }
 0x51f   : > { %v1521_v3 = vpack.c.bf16 %v1512_v1, %v1511_v0 }
 0x521   : > { %2541 = vmatprep.mubr.msk.bf16.mxu1 %vm512_vm0, %v1521_v3 }
 0x522   : > { %2542 = vmatmul.mubr.msk.bf16.gmra.mxu1 %vm512_vm0, %v1522_v4  ;;  %v3094_v4 = vld [vmem:[%s3207_s3 + $0x9] ss:$0 sm:$0xff] }
 0x5ca   : > { %v2531_v6 = vpop.f32.mrf.mxu1 }
 0x5cb   : > { %v1628_v50 = vadd.f32 %v2531_v6, %v2229_v7 }
 0x5cc   : > { %v1619_v37 = vpop.f32.mrf.mxu1 }
 0x5cd   : > { %v1620_v9 = vadd.f32 %v2229_v7, %v1619_v37  ;;  %v1684_v17 = vmax.f32 %v1628_v50, 0.0 }
 0x5ce   : > { %v2532_v8 = vpop.f32.mrf.mxu1 }
 0x5cf   : > { %v1631_v10 = vadd.f32 %v2532_v8, %v2229_v7  ;;  %v1682_v15 = vmax.f32 %v1620_v9, 0.0 }
 0x5d0   : > { %v1622_v11 = vpop.f32.mrf.mxu1 }
 0x5d1   : > { %v1623_v12 = vadd.f32 %v2229_v7, %v1622_v11  ;;  %v1685_v13 = vmax.f32 %v1631_v10, 0.0 }
 0x5d2   : > { %v2535_v14 = vpop.f32.mrf.mxu1 }
 0x5d3   : > { %v1683_v16 = vmax.f32 %v1623_v12, 0.0  ;;  %v1699_v20 = vpack.c.bf16 %v1685_v13, %v1684_v17  ;;  %v1644_v24 = vadd.f32 %v2535_v14, %v2229_v7  ;;  %v3104_v12 = vld [vmem:[%s3207_s3 + $0xa] ss:$0 sm:$0xff] }
 0x5d4   : > { %v1635_v18 = vpop.f32.mrf.mxu1 }
 0x5d5   : > { %v1698_v19 = vpack.c.bf16 %v1683_v16, %v1682_v15  ;;  %v1636_v22 = vadd.f32 %v2229_v7, %v1635_v18  ;;  %v1688_v31 = vmax.f32 %v1644_v24, 0.0 }
 0x5d6   : > { %v2536_v21 = vpop.f32.mrf.mxu1 }
 0x5d7   : > { %v1647_v23 = vadd.f32 %v2536_v21, %v2229_v7  ;;  %2553 = vmatprep.mubr.msk.bf16.mxu0 %vm512_vm0, %v1698_v19  ;;  %v1686_v29 = vmax.f32 %v1636_v22, 0.0 }
 0x5d8   : > { %v1638_v25 = vpop.f32.mrf.mxu1  ;;  %2554 = vmatmul.mubr.msk.bf16.vlgmr.msra.gmra.mxu0 %vm512_vm0, %v1699_v20 }
 0x5d9   : > { %v1639_v26 = vadd.f32 %v2229_v7, %v1638_v25  ;;  %v1689_v27 = vmax.f32 %v1647_v23, 0.0 }
 0x5da   : > { %v2539_v28 = vpop.f32.mrf.mxu1 }
 0x5db   : > { %v1687_v30 = vmax.f32 %v1639_v26, 0.0  ;;  %v1701_v34 = vpack.c.bf16 %v1689_v27, %v1688_v31  ;;  %v1660_v39 = vadd.f32 %v2539_v28, %v2229_v7 }
 0x5dc   : > { %v1651_v32 = vpop.f32.mrf.mxu1 }
 0x5dd   : > { %v1700_v33 = vpack.c.bf16 %v1687_v30, %v1686_v29  ;;  %v1652_v36 = vadd.f32 %v2229_v7, %v1651_v32  ;;  %v1692_v46 = vmax.f32 %v1660_v39, 0.0 }
 0x5de   : > { %v2540_v35 = vpop.f32.mrf.mxu1 }
 0x5df   : > { %v1663_v38 = vadd.f32 %v2540_v35, %v2229_v7  ;;  %2557 = vmatprep.mubr.msk.bf16.mxu0 %vm512_vm0, %v1700_v33  ;;  %v1690_v44 = vmax.f32 %v1652_v36, 0.0 }
 0x5e0   : > { %v1654_v40 = vpop.f32.mrf.mxu1  ;;  %2558 = vmatmul.mubr.msk.bf16.gmra.mxu0 %vm512_vm0, %v1701_v34 }
 0x5e1   : > { %v1655_v41 = vadd.f32 %v2229_v7, %v1654_v40  ;;  %v1693_v42 = vmax.f32 %v1663_v38, 0.0 }
 0x5e2   : > { %v2543_v43 = vpop.f32.mrf.mxu1 }
 0x5e3   : > { %v1691_v45 = vmax.f32 %v1655_v41, 0.0  ;;  %v1703_v49 = vpack.c.bf16 %v1693_v42, %v1692_v46  ;;  %v1676_v54 = vadd.f32 %v2543_v43, %v2229_v7 }
 0x5e4   : > { %v1667_v47 = vpop.f32.mrf.mxu1 }
 0x5e5   : > { %v1702_v48 = vpack.c.bf16 %v1691_v45, %v1690_v44  ;;  %v1668_v52 = vadd.f32 %v2229_v7, %v1667_v47  ;;  %v1696_v60 = vmax.f32 %v1676_v54, 0.0 }
 0x5e6   : > { %v2544_v51 = vpop.f32.mrf.mxu1 }
 0x5e7   : > { %v1679_v53 = vadd.f32 %v2544_v51, %v2229_v7  ;;  %2561 = vmatprep.mubr.msk.bf16.mxu0 %vm512_vm0, %v1702_v48  ;;  %v1694_v58 = vmax.f32 %v1668_v52, 0.0 }
 0x5e8   : > { %v1670_v55 = vpop.f32.mrf.mxu1  ;;  %2562 = vmatmul.mubr.msk.bf16.gmra.mxu0 %vm512_vm0, %v1703_v49 }
 0x5e9   : > { %v1671_v56 = vadd.f32 %v2229_v7, %v1670_v55  ;;  %v1697_v57 = vmax.f32 %v1679_v53, 0.0 }
 0x5eb   : > { %v1695_v59 = vmax.f32 %v1671_v56, 0.0  ;;  %v1705_v62 = vpack.c.bf16 %v1697_v57, %v1696_v60 }
 0x5ed   : > { %v1704_v61 = vpack.c.bf16 %v1695_v59, %v1694_v58 }
 0x5ef   : > { %2565 = vmatprep.mubr.msk.bf16.mxu1 %vm512_vm0, %v1704_v61 }
 0x5f0   : > { %2566 = vmatmul.mubr.msk.bf16.vlgmr.msra.gmra.mxu1 %vm512_vm0, %v1705_v62 }
 0x698   : > { %v2555_v0 = vpop.f32.mrf.mxu0 }
 0x699   : > { %v1811_v1 = vadd.f32 %v2555_v0, %v3088_v63 }
 0x69a   : > { %v1802_v2 = vpop.f32.mrf.mxu0 }
 0x69b   : > { %v1867_v3 = vmax.f32 %v1811_v1, 0.0  ;;  %v1803_v5 = vadd.f32 %v3088_v63, %v1802_v2 }
 0x69c   : > { %v2556_v6 = vpop.f32.mrf.mxu0 }
 0x69d   : > { %v1865_v37 = vmax.f32 %v1803_v5, 0.0  ;;  %v1814_v7 = vadd.f32 %v2556_v6, %v3088_v63  ;;  %v1888_v8 = vmul.f32 %v3094_v4, %v1867_v3 }
 0x69e   : > { %v1805_v9 = vpop.f32.mrf.mxu0 }
 0x69f   : > { %v1886_v10 = vmul.f32 %v3094_v4, %v1865_v37  ;;  %v1868_v50 = vmax.f32 %v1814_v7, 0.0  ;;  %v1806_v11 = vadd.f32 %v3088_v63, %v1805_v9  ;;  %v1909_v19 = vadd.f32 %v3104_v12, %v1888_v8 }
 0x6a0   : > { %v2559_v13 = vpop.f32.mrf.mxu0 }
 0x6a1   : > { %v1866_v14 = vmax.f32 %v1806_v11, 0.0  ;;  %v1827_v15 = vadd.f32 %v2559_v13, %v3088_v63  ;;  %v1907_v16 = vadd.f32 %v3104_v12, %v1886_v10  ;;  %v1889_v17 = vmul.f32 %v3094_v4, %v1868_v50 }
 0x6a2   : > { %v1818_v18 = vpop.f32.mrf.mxu0  ;;  %v1929_v30 = vsel %vm512_vm0, %v1909_v19, 0.0 }
 0x6a3   : > { %v1887_v20 = vmul.f32 %v3094_v4, %v1866_v14  ;;  %v1871_v21 = vmax.f32 %v1827_v15, 0.0  ;;  %v1819_v22 = vadd.f32 %v3088_v63, %v1818_v18  ;;  %v1923_v23 = vsel %vm512_vm0, %v1907_v16, 0.0 }
 0x6a4   : > { %v2560_v24 = vpop.f32.mrf.mxu0  ;;  %1924 = vadd.xlane.f32.xlu0 %v1923_v23  ;;  %v1910_v31 = vadd.f32 %v3104_v12, %v1889_v17 }
 0x6a5   : > { %v1892_v25 = vmul.f32 %v3094_v4, %v1871_v21  ;;  %v1869_v26 = vmax.f32 %v1819_v22, 0.0  ;;  %v1830_v27 = vadd.f32 %v2560_v24, %v3088_v63  ;;  %v1908_v28 = vadd.f32 %v3104_v12, %v1887_v20 }
 0x6a6   : > { %v1821_v29 = vpop.f32.mrf.mxu0  ;;  %v1932_v43 = vsel %vm512_vm0, %v1910_v31, 0.0 }
 0x6a7   : > { %v1890_v32 = vmul.f32 %v3094_v4, %v1869_v26  ;;  %v1872_v33 = vmax.f32 %v1830_v27, 0.0  ;;  %v1822_v34 = vadd.f32 %v3088_v63, %v1821_v29  ;;  %v1926_v35 = vsel %vm512_vm0, %v1908_v28, 0.0 }
 0x6a8   : > { %v2563_v36 = vpop.f32.mrf.mxu0  ;;  %1927 = vadd.xlane.f32.xlu1 %v1926_v35  ;;  %1930 = vadd.xlane.f32.xlu0 %v1929_v30  ;;  %v1913_v38 = vadd.f32 %v3104_v12, %v1892_v25 }
 0x6a9   : > { %v1870_v39 = vmax.f32 %v1822_v34, 0.0  ;;  %v1843_v40 = vadd.f32 %v2563_v36, %v3088_v63  ;;  %v1893_v41 = vmul.f32 %v3094_v4, %v1872_v33  ;;  %v1911_v44 = vadd.f32 %v3104_v12, %v1890_v32 }
 0x6aa   : > { %v1834_v42 = vpop.f32.mrf.mxu0  ;;  %v1941_v48 = vsel %vm512_vm0, %v1913_v38, 0.0 }
 0x6ab   : > { %v1891_v45 = vmul.f32 %v3094_v4, %v1870_v39  ;;  %v1875_v46 = vmax.f32 %v1843_v40, 0.0  ;;  %v1835_v47 = vadd.f32 %v3088_v63, %v1834_v42  ;;  %v1935_v56 = vsel %vm512_vm0, %v1911_v44, 0.0 }
 0x6ac   : > { %v2564_v49 = vpop.f32.mrf.mxu0  ;;  %1942 = vadd.xlane.f32.xlu1 %v1941_v48  ;;  %1933 = vadd.xlane.f32.xlu0 %v1932_v43  ;;  %v1914_v57 = vadd.f32 %v3104_v12, %v1893_v41 }
 0x6ad   : > { %v1896_v51 = vmul.f32 %v3094_v4, %v1875_v46  ;;  %v1873_v52 = vmax.f32 %v1835_v47, 0.0  ;;  %v1846_v53 = vadd.f32 %v2564_v49, %v3088_v63  ;;  %v1912_v54 = vadd.f32 %v3104_v12, %v1891_v45 }
 0x6ae   : > { %v1837_v55 = vpop.f32.mrf.mxu0  ;;  %v1944_v6 = vsel %vm512_vm0, %v1914_v57, 0.0 }
 0x6af   : > { %v1894_v58 = vmul.f32 %v3094_v4, %v1873_v52  ;;  %v1876_v59 = vmax.f32 %v1846_v53, 0.0  ;;  %v1838_v60 = vadd.f32 %v3088_v63, %v1837_v55  ;;  %v1938_v61 = vsel %vm512_vm0, %v1912_v54, 0.0 }
 0x6b0   : > { %v2567_v62 = vpop.f32.mrf.mxu1  ;;  %1936 = vadd.xlane.f32.xlu1 %v1935_v56  ;;  %1939 = vadd.xlane.f32.xlu0 %v1938_v61  ;;  %v1917_v0 = vadd.f32 %v3104_v12, %v1896_v51 }
 0x6b1   : > { %v1874_v1 = vmax.f32 %v1838_v60, 0.0  ;;  %v1859_v2 = vadd.f32 %v2567_v62, %v3088_v63  ;;  %v1897_v3 = vmul.f32 %v3094_v4, %v1876_v59  ;;  %v1915_v37 = vadd.f32 %v3104_v12, %v1894_v58 }
 0x6b2   : > { %v1850_v5 = vpop.f32.mrf.mxu1  ;;  %v1953_v10 = vsel %vm512_vm0, %v1917_v0, 0.0 }
 0x6b3   : > { %v1895_v7 = vmul.f32 %v3094_v4, %v1874_v1  ;;  %v1879_v8 = vmax.f32 %v1859_v2, 0.0  ;;  %v1851_v9 = vadd.f32 %v3088_v63, %v1850_v5  ;;  %v1947_v17 = vsel %vm512_vm0, %v1915_v37, 0.0 }
 0x6b4   : > { %v2568_v50 = vpop.f32.mrf.mxu1  ;;  %1954 = vadd.xlane.f32.xlu1 %v1953_v10  ;;  %1945 = vadd.xlane.f32.xlu0 %v1944_v6  ;;  %v1918_v18 = vadd.f32 %v3104_v12, %v1897_v3 }
 0x6b5   : > { %v1900_v11 = vmul.f32 %v3094_v4, %v1879_v8  ;;  %v1877_v13 = vmax.f32 %v1851_v9, 0.0  ;;  %v1862_v14 = vadd.f32 %v2568_v50, %v3088_v63  ;;  %v1916_v15 = vadd.f32 %v3104_v12, %v1895_v7 }
 0x6b6   : > { %v1853_v16 = vpop.f32.mrf.mxu1  ;;  %v1956_v25 = vsel %vm512_vm0, %v1918_v18, 0.0 }
 0x6b7   : > { %v1898_v19 = vmul.f32 %v3094_v4, %v1877_v13  ;;  %v1880_v20 = vmax.f32 %v1862_v14, 0.0  ;;  %v1854_v21 = vadd.f32 %v3088_v63, %v1853_v16  ;;  %v1950_v22 = vsel %vm512_vm0, %v1916_v15, 0.0 }
 0x6b8   : > { %1948 = vadd.xlane.f32.xlu1 %v1947_v17  ;;  %1951 = vadd.xlane.f32.xlu0 %v1950_v22  ;;  %v1921_v23 = vadd.f32 %v3104_v12, %v1900_v11 }
 0x6b9   : > { %v1878_v24 = vmax.f32 %v1854_v21, 0.0  ;;  %v1901_v26 = vmul.f32 %v3094_v4, %v1880_v20  ;;  %v1919_v29 = vadd.f32 %v3104_v12, %v1898_v19 }
 0x6ba   : > { %v1965_v28 = vsel %vm512_vm0, %v1921_v23, 0.0 }
 0x6bb   : > { %v1899_v27 = vmul.f32 %v3094_v4, %v1878_v24  ;;  %v1959_v30 = vsel %vm512_vm0, %v1919_v29, 0.0  ;;  %v1922_v32 = vadd.f32 %v3104_v12, %v1901_v26 }
 0x6bc   : > { %1966 = vadd.xlane.f32.xlu1 %v1965_v28  ;;  %1957 = vadd.xlane.f32.xlu0 %v1956_v25 }
 0x6bd   : > { %v1920_v63 = vadd.f32 %v3104_v12, %v1899_v27  ;;  %v1968_v33 = vsel %vm512_vm0, %v1922_v32, 0.0 }
 0x6bf   : > { %v1962_v31 = vsel %vm512_vm0, %v1920_v63, 0.0 }
 0x6c0   : > { %1960 = vadd.xlane.f32.xlu1 %v1959_v30  ;;  %1963 = vadd.xlane.f32.xlu0 %v1962_v31 }
 0x6c4   : > { %1969 = vadd.xlane.f32.xlu0 %v1968_v33 }
 0x72d   : > { %v1925_v4 = vpop.xlane.xlu0 %1924 }
 0x72e   : > { %1971 = vxpose.xlu1.b32.start [1/16] (narrow) %v1925_v4, 8 }
 0x731   : > { %v1928_v34 = vpop.xlane.xlu1 %1927  ;;  %v1931_v35 = vpop.xlane.xlu0 %1930 }
 0x732   : > { %1972 = vxpose.xlu1.b32.cont [2/16] (narrow) %v1928_v34, 8 }
 0x735   : > { %v1943_v36 = vpop.xlane.xlu1 %1942  ;;  %v1934_v38 = vpop.xlane.xlu0 %1933 }
 0x736   : > { %1973 = vxpose.xlu1.b32.cont [3/16] (narrow) %v1931_v35, 8 }
 0x739   : > { %v1937_v39 = vpop.xlane.xlu1 %1936  ;;  %v1940_v40 = vpop.xlane.xlu0 %1939 }
 0x73a   : > { %1974 = vxpose.xlu1.b32.cont [4/16] (narrow) %v1934_v38, 8 }
 0x73d   : > { %v1955_v12 = vpop.xlane.xlu1 %1954  ;;  %v1946_v41 = vpop.xlane.xlu0 %1945 }
 0x73e   : > { %1975 = vxpose.xlu1.b32.cont [5/16] (narrow) %v1937_v39, 8 }
 0x741   : > { %v1949_v42 = vpop.xlane.xlu1 %1948  ;;  %v1952_v43 = vpop.xlane.xlu0 %1951 }
 0x742   : > { %1976 = vxpose.xlu1.b32.cont [6/16] (narrow) %v1940_v40, 8 }
 0x745   : > { %v1967_v44 = vpop.xlane.xlu1 %1966  ;;  %v1958_v45 = vpop.xlane.xlu0 %1957 }
 0x746   : > { %1977 = vxpose.xlu1.b32.cont [7/16] (narrow) %v1943_v36, 8 }
 0x749   : > { %v1961_v46 = vpop.xlane.xlu1 %1960  ;;  %v1964_v47 = vpop.xlane.xlu0 %1963 }
 0x74a   : > { %1978 = vxpose.xlu1.b32.cont [8/16] (narrow) %v1946_v41, 8 }
 0x74d   : > { %v1970_v48 = vpop.xlane.xlu0 %1969 }
 0x74e   : > { %1979 = vxpose.xlu1.b32.cont [9/16] (narrow) %v1949_v42, 8 }
 0x752   : > { %1980 = vxpose.xlu1.b32.cont [10/16] (narrow) %v1952_v43, 8 }
 0x756   : > { %1981 = vxpose.xlu1.b32.cont [11/16] (narrow) %v1955_v12, 8 }
 0x75a   : > { %1982 = vxpose.xlu1.b32.cont [12/16] (narrow) %v1958_v45, 8 }
 0x75e   : > { %1983 = vxpose.xlu1.b32.cont [13/16] (narrow) %v1961_v46, 8 }
 0x762   : > { %1984 = vxpose.xlu1.b32.cont [14/16] (narrow) %v1964_v47, 8 }
 0x766   : > { %1985 = vxpose.xlu1.b32.cont [15/16] (narrow) %v1967_v44, 8 }
 0x76a   : > { %1986 = vxpose.xlu1.b32.end [16/16] (narrow) %v1970_v48, 8 }
 0x7aa   : > { %v1987_v49 = vpop.trf.xlu1 }
 0x7ab   : > { %v2265_v51 = vmul.f32 -1.442695, %v1987_v49 }
 0x7ad   : > { %2663 = vpow2.f32 %v2265_v51 }
 0x7ba   : > { %v2664_v52 = vpop.eup %2663 }
 0x7bb   : > { %v2006_v53 = vadd.f32 1.0, %v2664_v52 }
 0x7bd   : > { %2665 = vrcp.f32 %v2006_v53 }
 0x7ca   : > { %v2666_v54 = vpop.eup %2665 }
 0x7cb   : > { %2009 = vst [vmem:[%s206_s6] sm:$0x1] %v2666_v54 }
 0x7cc   : > { %2680 = shalt.err (!%p2677_p3)
}
 0x7cd   : > { %s2681_s29 = scalar_lea.hbm %s3169_s10, 16  ;;  %s2685_s23 = scalar_lea.hbm %s3208_s4, 32 }
 0x7ce   : > { %p2682_p4 = scmp.ne.s32.totalorder %s3169_s10, %s2681_s29  ;;  %p2686_p9 = scmp.lt.s32.totalorder %s3169_s10, %s3208_s4 }
 0x7cf   : > { %p2687_p10 = scmp.lt.s32.totalorder %s2685_s23, %s2681_s29 }
 0x7d0   : > { %p2683_p7 = pnand %p2682_p4, %p2791_p5 }
 0x7d1   : > { %p2688_p11 = por %p2687_p10, %p2686_p9 }
 0x7d2   : > { %p2684_p8 = pneg %p2683_p7 }
 0x7d4   : > { %p2689_p12 = pnand %p2688_p11, %p2684_p8 }
 0x7d6   : > { %2692 = shalt.err (!%p2689_p12)
}
 0x7d7   : > { %2577 = dma.vmem_to_hbm [thread:$0]  (%p2791_p5), %s2024_s7, 16, %s3169_s10, %s2011_s11  }
 0x7d8 PF: > { %p2583_p13 = scmp.ge.s32.totalorder %s2727_s18, 2  ;;  %s2035_s30 = sand.u32 1, %s2715_s15  }
 0x7d9   : > { %s2036_s5 = scalar_lea.sflag [#allocation3], %s2035_s30 }
 0x7da   : > { %p2580_p0 = pnand %p2583_p13, %p2795_p6 }
 0x7dc   : > { %p2581_p1 = pneg %p2580_p0 }
 0x7de   : > { %2710 = dma.done.wait (%p2581_p1), %s2036_s5, 16  }
 0x7df   : > { %2712 = vsyncadd (%p2581_p1), %s2036_s5, 4294967280  ;;  %p14_p2 = scmp.ge.s32.totalorder %s2779_s21, 4   ;;  %s3211_s15 = smov %s2719_s16 }
 0x7e0   : > { %s3212_s16 = smov %s2723_s17  ;;  %s3213_s17 = smov %s2789_s24 }
 0x7e1   : > { %s3214_s18 = smov %s2779_s21  ;;  %16 = sbr.rel (!%p14_p2) target bundleno = 3 (0x3), region = 81 }
 0x7e6   :  { %2040 = vsyncpa [#allocation3], 1 }
 0x7e7   :  { %2042 = vsyncpa [#allocation3 + $0x1], 1 }

</bundles_post_ra>
